<compile_context>
chip_gen: v7x
topology: tpu7x:2x2x1
jax: 0.10.0
libtpu: 0.0.40
codegen_flags: <defaults>
</compile_context>

<pallas_src>
import jax
import jax.numpy as jnp
from jax.experimental import pallas as pl
from jax.experimental.pallas import tpu as pltpu


def _softplus(z):
    # Single-evaluation, numerically stable softplus:
    # 1 exp + 1 log1p on the EUP; max/abs/add co-issue on the VPU slots.
    return jnp.maximum(z, 0.0) + jnp.log1p(jnp.exp(-jnp.abs(z)))


def cond_gamma_mean_kernel(x_ref, w_ref, b_ref, o_ref):
    d_y = o_ref.shape[-1]
    # Fused linear layer for both heads: one (tile_m, d_x) x (d_x, 2*d_y)
    # MXU pass with f32 accumulation.
    y = jnp.dot(x_ref[...], w_ref[...], preferred_element_type=jnp.float32)
    y = y + b_ref[...]
    sp = _softplus(y)
    conc = sp[:, :d_y]          # static slices: free
    rate = sp[:, d_y:]
    # Conditional mean of Gamma(conc, rate) = conc / rate.
    o_ref[...] = conc * pl.reciprocal(rate)   # exact reciprocal keeps 1e-5 tol


def cond_gamma_mean(x, wc, bc, wr, br, *, max_tile_m=512, use_bf16=False):
    """forward(x) = softplus(x@Wc+bc) / softplus(x@Wr+br) via one pallas_call."""
    n, d_x = x.shape
    d_y = wc.shape[1]

    # Fuse the two heads: a single resident weight / bias slab.
    w = jnp.concatenate([wc, wr], axis=1)          # (d_x, 2*d_y)
    b = jnp.concatenate([bc, br], axis=1)          # (1, 2*d_y)

    if use_bf16:
        # Optional: bf16 matmul (still f32 accumulation).  Halves x/weight DMA
        # bytes and MXU passes for large d_x/d_y, but loosens accuracy to
        # ~1e-3 relative, so it is off by default for the 1e-5 check.
        x = x.astype(jnp.bfloat16)
        w = w.astype(jnp.bfloat16)

    # Row padding / tiling.  One big tile for small n (no grid overhead);
    # otherwise max_tile_m-row tiles with an even tile count (v7x: 2 TCs).
    n_pad = 8 * pl.cdiv(n, 8)
    if n_pad <= max_tile_m:
        tile_m = n_pad
        n_tiles = 1
    else:
        tile_m = max_tile_m
        n_tiles = pl.cdiv(n_pad, tile_m)
        if n_tiles % 2:
            n_tiles += 1
        n_pad = n_tiles * tile_m
    if n_pad != n:
        x = jnp.pad(x, ((0, n_pad - n), (0, 0)))

    out = pl.pallas_call(
        cond_gamma_mean_kernel,
        out_shape=jax.ShapeDtypeStruct((n_pad, d_y), jnp.float32),
        grid_spec=pltpu.PrefetchScalarGridSpec(
            num_scalar_prefetch=0,
            grid=(n_tiles,),
            in_specs=[
                pl.BlockSpec((tile_m, d_x), lambda i: (i, 0)),    # x row tile
                pl.BlockSpec((d_x, 2 * d_y), lambda i: (0, 0)),   # [Wc | Wr]
                pl.BlockSpec((1, 2 * d_y), lambda i: (0, 0)),     # [bc | br]
            ],
            out_specs=pl.BlockSpec((tile_m, d_y), lambda i: (i, 0)),
        ),
        compiler_params=pltpu.CompilerParams(
            dimension_semantics=("parallel",),
        ),
    )(x, w, b)
    return out[:n]


def reference(x, wc, bc, wr, br):
    conc = jax.nn.softplus(x @ wc + bc)
    rate = jax.nn.softplus(x @ wr + br)
    return conc / rate


if __name__ == "__main__":
    key = jax.random.PRNGKey(0)
    # n_smps deliberately not a multiple of 8 to exercise the padding path.
    n_smps, d_x, d_y = 200, 32, 128

    k_x, k_wc, k_bc, k_wr, k_br = jax.random.split(key, 5)
    x = jax.random.normal(k_x, (n_smps, d_x), dtype=jnp.float32)
    # deterministic synthetic parameters (not a checkpoint load)
    wc = 0.1 * jax.random.normal(k_wc, (d_x, d_y), dtype=jnp.float32)
    bc = 0.1 * jax.random.normal(k_bc, (1, d_y), dtype=jnp.float32)
    wr = 0.1 * jax.random.normal(k_wr, (d_x, d_y), dtype=jnp.float32)
    br = 0.1 * jax.random.normal(k_br, (1, d_y), dtype=jnp.float32)

    ref = reference(x, wc, bc, wr, br)

    # Single-tile path (n_pad <= max_tile_m => grid=(1,), zero step overhead).
    out1 = jax.block_until_ready(cond_gamma_mean(x, wc, bc, wr, br))
    assert out1.shape == (n_smps, d_y)
    assert jnp.allclose(out1, ref, atol=1e-5, rtol=1e-5), "single-tile mismatch"

    # Multi-tile path (forces a >1-step, even-length grid + row padding).
    out2 = jax.block_until_ready(
        cond_gamma_mean(x, wc, bc, wr, br, max_tile_m=64))
    assert out2.shape == (n_smps, d_y)
    assert jnp.allclose(out2, ref, atol=1e-5, rtol=1e-5), "tiled mismatch"

    print("KERNEL_OK")
</pallas_src>

<mosaic_0001>
module attributes {stable_mosaic.version = 11 : i64} {
  func.func @cond_gamma_mean_kernel(%arg0: i32, %arg1: memref<200x32xf32, #tpu.memory_space<vmem>>, %arg2: memref<32x256xf32, #tpu.memory_space<vmem>>, %arg3: memref<1x256xf32, #tpu.memory_space<vmem>>, %arg4: memref<200x128xf32, #tpu.memory_space<vmem>>) attributes {dimension_semantics = [#tpu.dimension_semantics<parallel>], iteration_bounds = array<i64: 1>, scalar_prefetch = 0 : i64, scratch_operands = 0 : i64, tpu.core_type = #tpu.core_type<tc>, window_params = [{transform_indices = @transform_0, window_bounds = array<i64: 200, 32>}, {pipeline_mode = #tpu.pipeline_mode<synchronous>, transform_indices = @transform_1, window_bounds = array<i64: 32, 256>}, {pipeline_mode = #tpu.pipeline_mode<synchronous>, transform_indices = @transform_2, window_bounds = array<i64: 1, 256>}, {transform_indices = @transform_3, window_bounds = array<i64: 200, 128>}]} {
    %c0 = arith.constant 0 : index
    %c0_0 = arith.constant 0 : index
    %0 = vector.load %arg1[%c0, %c0_0] : memref<200x32xf32, #tpu.memory_space<vmem>>, vector<200x32xf32>
    %c0_1 = arith.constant 0 : index
    %c0_2 = arith.constant 0 : index
    %1 = vector.load %arg2[%c0_1, %c0_2] : memref<32x256xf32, #tpu.memory_space<vmem>>, vector<32x256xf32>
    %cst = arith.constant dense<0.000000e+00> : vector<200x256xf32>
    %2 = tpu.matmul %0, %1, %cst {dimension_numbers = #tpu.dot_dimension_numbers<[1], [0], [0], [1], [0, 0, 1, 1], [], []>} : vector<200x32xf32>, vector<32x256xf32>, vector<200x256xf32> -> vector<200x256xf32>
    %c0_3 = arith.constant 0 : index
    %c0_4 = arith.constant 0 : index
    %3 = vector.load %arg3[%c0_3, %c0_4] : memref<1x256xf32, #tpu.memory_space<vmem>>, vector<1x256xf32>
    %4 = vector.broadcast %3 : vector<1x256xf32> to vector<200x256xf32>
    %5 = arith.addf %2, %4 : vector<200x256xf32>
    %cst_5 = arith.constant 0.000000e+00 : f32
    %6 = vector.broadcast %cst_5 : f32 to vector<200x256xf32>
    %7 = arith.maximumf %5, %6 : vector<200x256xf32>
    %8 = math.absf %5 : vector<200x256xf32>
    %cst_6 = arith.constant 0.000000e+00 : f32
    %9 = vector.broadcast %cst_6 : f32 to vector<200x256xf32>
    %10 = arith.subf %9, %8 : vector<200x256xf32>
    %11 = math.exp %10 : vector<200x256xf32>
    %12 = math.log1p %11 : vector<200x256xf32>
    %13 = arith.addf %7, %12 : vector<200x256xf32>
    %14 = vector.extract_strided_slice %13 {offsets = [0, 0], sizes = [200, 128], strides = [1, 1]} : vector<200x256xf32> to vector<200x128xf32>
    %15 = vector.extract_strided_slice %13 {offsets = [0, 128], sizes = [200, 128], strides = [1, 1]} : vector<200x256xf32> to vector<200x128xf32>
    %16 = tpu.reciprocal %15 : vector<200x128xf32> -> vector<200x128xf32>
    %17 = arith.mulf %14, %16 : vector<200x128xf32>
    %c0_7 = arith.constant 0 : index
    %c0_8 = arith.constant 0 : index
    %18 = vector.load %arg4[%c0_7, %c0_8] : memref<200x128xf32, #tpu.memory_space<vmem>>, vector<200x128xf32>
    tpu.vector_store %arg4[%c0_7, %c0_8], %17 {strides = array<i32>} : memref<200x128xf32, #tpu.memory_space<vmem>>, vector<200x128xf32>,
    return
  }
  func.func @transform_0(%arg0: i32) -> (i32, i32) {
    %c0_i32 = arith.constant 0 : i32
    %c0_i32_0 = arith.constant 0 : i32
    return %arg0, %c0_i32 : i32, i32
  }
  func.func @transform_1(%arg0: i32) -> (i32, i32) {
    %c0_i32 = arith.constant 0 : i32
    %c0_i32_0 = arith.constant 0 : i32
    %c0_i32_1 = arith.constant 0 : i32
    return %c0_i32, %c0_i32_0 : i32, i32
  }
  func.func @transform_2(%arg0: i32) -> (i32, i32) {
    %c0_i32 = arith.constant 0 : i32
    %c0_i32_0 = arith.constant 0 : i32
    %c0_i32_1 = arith.constant 0 : i32
    return %c0_i32, %c0_i32_0 : i32, i32
  }
  func.func @transform_3(%arg0: i32) -> (i32, i32) {
    %c0_i32 = arith.constant 0 : i32
    %c0_i32_0 = arith.constant 0 : i32
    return %arg0, %c0_i32 : i32, i32
  }
}

</mosaic_0001>

<bundles_post_ra>
// kernel: tpu_custom_call.1
= control target key start
LH: loop header
LB: loop body
LE: loop exit
PB: predicated region body
PF: predicated region fallthrough
CT: control target
= control target key end

     0   :  { %v1507_v7 = vmov 0.0   ;;  %vm60_vm0 = vcmask 261120   ;;  %s2560_s0 = inlined_call_operand.vmem [shape: f32[200,32], index: 0, kind: input, shape index: {}]   ;;  %s2561_s1 = inlined_call_operand.vmem [shape: f32[32,256], index: 1, kind: input, shape index: {}]   ;;  %s2562_s2 = inlined_call_operand.vmem [shape: f32[1,256], index: 2, kind: input, shape index: {}]   ;;  %s2563_s3 = inlined_call_operand.hbm [shape: f32[200,128], index: 3, kind: output, shape index: {}]  }
   0x1   :  { %v41_v0 = vld [vmem:[%s2561_s1 + $0x8] sm:$0xff]  ;;  %v43_v1 = vld [vmem:[%s2561_s1 + $0x18] sm:$0xff]  ;;  %v40_v2 = vld [vmem:[%s2561_s1] sm:$0xff]  ;;  %200 = vmatprep.mubr.f32.mxu0 %v1507_v7  ;;  %278 = vmatprep.mubr.f32.mxu1 %v1507_v7 }
   0x2   :  { %v1217_v3 = vpack.c.bf16 %v43_v1, %v41_v0  ;;  %v42_v4 = vld [vmem:[%s2561_s1 + $0x10] sm:$0xff]  ;;  %v45_v5 = vld [vmem:[%s2561_s1 + $0x28] sm:$0xff]  ;;  %v47_v6 = vld [vmem:[%s2561_s1 + $0x38] sm:$0xff] }
   0x3   :  { %v1219_v8 = vpack.c.bf16 %v42_v4, %v40_v2  ;;  %v1221_v9 = vpack.c.bf16 %v47_v6, %v45_v5  ;;  %v44_v10 = vld [vmem:[%s2561_s1 + $0x20] sm:$0xff]  ;;  %v46_v11 = vld [vmem:[%s2561_s1 + $0x30] sm:$0xff]  ;;  %v28_v14 = vld [vmem:[%s2560_s0 + $0x68] sm:$0xff] }
   0x4   :  { %1218 = vmatprep.subr.bf16.mxu0 %v1217_v3  ;;  %1225 = vmatprep.subr.bf16.mxu1 %v1217_v3  ;;  %v1223_v12 = vpack.c.bf16 %v46_v11, %v44_v10  ;;  %v15_v13 = vld [vmem:[%s2560_s0] sm:$0xff] }
   0x5   :  { %1220 = vmatpush1.bf16.msra.mxu0 %v1219_v8  ;;  %1227 = vmatpush1.bf16.msra.mxu1 %v1219_v8 }
   0x6   :  { %1222 = vmatprep.subr.bf16.mxu0 %v1221_v9  ;;  %1226 = vmatprep.subr.bf16.mxu1 %v1221_v9 }
   0x9   :  { %1224 = vmatpush1.bf16.msra.mxu0 %v1223_v12  ;;  %1228 = vmatpush1.bf16.msra.mxu1 %v1223_v12 }
   0xc   :  { %1192 = vmatmul.mubr.msk.f32.vlgmr.msra.gmra.mrb[0].mxu0 %vm60_vm0, %v15_v13  ;;  %1205 = vmatmul.mubr.msk.f32.vlgmr.msra.gmra.mrb[0].mxu1 %vm60_vm0, %v28_v14 }
   0xd   :  { %8 = vsyncpa [#allocation3], 0  ;;  %206 = vmatprep.mubr.f32.mxu0 %v1507_v7  ;;  %284 = vmatprep.mubr.f32.mxu1 %v1507_v7  ;;  %v16_v15 = vld [vmem:[%s2560_s0 + $0x8] sm:$0xff]  ;;  %v29_v16 = vld [vmem:[%s2560_s0 + $0x70] sm:$0xff]  ;;  %v50_v38 = vlaneseq }
   0xe   :  { %v17_v17 = vld [vmem:[%s2560_s0 + $0x10] sm:$0xff]  ;;  %v30_v18 = vld [vmem:[%s2560_s0 + $0x78] sm:$0xff]  ;;  %v31_v20 = vld [vmem:[%s2560_s0 + $0x80] sm:$0xff] }
   0xf   :  { %v18_v19 = vld [vmem:[%s2560_s0 + $0x18] sm:$0xff]  ;;  %v19_v21 = vld [vmem:[%s2560_s0 + $0x20] sm:$0xff]  ;;  %v32_v22 = vld [vmem:[%s2560_s0 + $0x88] sm:$0xff]  ;;  %v51_v39 = vshrl.u32 %v50_v38, 7 }
  0x10   :  { %1193 = vmatmul.mubr.msk.f32.gmra.mrb[2].mxu0 %vm60_vm0, %v16_v15  ;;  %1206 = vmatmul.mubr.msk.f32.gmra.mrb[2].mxu1 %vm60_vm0, %v29_v16  ;;  %v20_v23 = vld [vmem:[%s2560_s0 + $0x28] sm:$0xff]  ;;  %v33_v24 = vld [vmem:[%s2560_s0 + $0x90] sm:$0xff]  ;;  %v34_v26 = vld [vmem:[%s2560_s0 + $0x98] sm:$0xff] }
  0x11   :  { %212 = vmatprep.mubr.f32.mxu0 %v1507_v7  ;;  %290 = vmatprep.mubr.f32.mxu1 %v1507_v7  ;;  %v21_v25 = vld [vmem:[%s2560_s0 + $0x30] sm:$0xff]  ;;  %v22_v27 = vld [vmem:[%s2560_s0 + $0x38] sm:$0xff]  ;;  %v35_v28 = vld [vmem:[%s2560_s0 + $0xa0] sm:$0xff]  ;;  %v52_v40 = vsub.s32 0, %v51_v39  ;;  %v56_v42 = vsub.s32 1, %v51_v39 }
  0x12   :  { %v23_v29 = vld [vmem:[%s2560_s0 + $0x40] sm:$0xff]  ;;  %v36_v30 = vld [vmem:[%s2560_s0 + $0xa8] sm:$0xff]  ;;  %v37_v32 = vld [vmem:[%s2560_s0 + $0xb0] sm:$0xff] }
  0x13   :  { %v24_v31 = vld [vmem:[%s2560_s0 + $0x48] sm:$0xff]  ;;  %v25_v33 = vld [vmem:[%s2560_s0 + $0x50] sm:$0xff]  ;;  %v38_v34 = vld [vmem:[%s2560_s0 + $0xb8] sm:$0xff] }
  0x14   :  { %1194 = vmatmul.mubr.msk.f32.gmra.mrb[4].mxu0 %vm60_vm0, %v17_v17  ;;  %1207 = vmatmul.mubr.msk.f32.gmra.mrb[4].mxu1 %vm60_vm0, %v30_v18  ;;  %v26_v35 = vld [vmem:[%s2560_s0 + $0x58] sm:$0xff]  ;;  %v39_v36 = vld [vmem:[%s2560_s0 + $0xc0] sm:$0xff] }
  0x15   :  { %218 = vmatprep.mubr.f32.mxu0 %v1507_v7  ;;  %296 = vmatprep.mubr.f32.mxu1 %v1507_v7  ;;  %v27_v37 = vld [vmem:[%s2560_s0 + $0x60] sm:$0xff]  ;;  %s1508_s0 = smov [#allocation2]  }
  0x16   :  { %v48_v41 = vld [vmem:[%s2562_s2] sm:$0x3]  ;;  %s1181_s2 = sshll.u32 %s1508_s0, 4  ;;  %s1182_s2 = int_to_ptr.vmem [resolvable:$true] %s1181_s2 }
  0x17   :  { %v1683_v43 = vrot.slane %v48_v41, %v52_v40  ;;  %v1685_v44 = vrot.slane %v48_v41, %v56_v42  ;;  %s1483_s24 = scalar_lea.vmem %s1182_s2, 3200  ;;  %p1488_p1 = scmp.lt.s32.totalorder %s1182_s2, %s1182_s2 }
  0x18   :  { %1195 = vmatmul.mubr.msk.f32.gmra.mrb[6].mxu0 %vm60_vm0, %v18_v19  ;;  %1208 = vmatmul.mubr.msk.f32.gmra.mrb[6].mxu1 %vm60_vm0, %v31_v20  ;;  %p1484_p0 = scmp.ne.s32.totalorder %s1182_s2, %s1483_s24  ;;  %p1489_p2 = scmp.lt.s32.totalorder %s1483_s24, %s1483_s24 }
  0x19   :  { %224 = vmatprep.mubr.f32.mxu0 %v1507_v7  ;;  %302 = vmatprep.mubr.f32.mxu1 %v1507_v7 }
  0x1a   :  { %p1490_p3 = por %p1489_p2, %p1488_p1 }
  0x1c   :  { %1196 = vmatmul.mubr.msk.f32.gmra.mrb[8].mxu0 %vm60_vm0, %v19_v21  ;;  %1209 = vmatmul.mubr.msk.f32.gmra.mrb[8].mxu1 %vm60_vm0, %v32_v22  ;;  %p1491_p4 = pnand %p1490_p3, %p1484_p0 }
  0x1d   :  { %230 = vmatprep.mubr.f32.mxu0 %v1507_v7  ;;  %308 = vmatprep.mubr.f32.mxu1 %v1507_v7 }
  0x20   :  { %1197 = vmatmul.mubr.msk.f32.gmra.mrb[10].mxu0 %vm60_vm0, %v20_v23  ;;  %1210 = vmatmul.mubr.msk.f32.gmra.mrb[10].mxu1 %vm60_vm0, %v33_v24 }
  0x21   :  { %236 = vmatprep.mubr.f32.mxu0 %v1507_v7  ;;  %314 = vmatprep.mubr.f32.mxu1 %v1507_v7 }
  0x24   :  { %1198 = vmatmul.mubr.msk.f32.gmra.mrb[12].mxu0 %vm60_vm0, %v21_v25  ;;  %1211 = vmatmul.mubr.msk.f32.gmra.mrb[12].mxu1 %vm60_vm0, %v34_v26 }
  0x25   :  { %242 = vmatprep.mubr.f32.mxu0 %v1507_v7  ;;  %320 = vmatprep.mubr.f32.mxu1 %v1507_v7 }
  0x28   :  { %1199 = vmatmul.mubr.msk.f32.gmra.mrb[14].mxu0 %vm60_vm0, %v22_v27  ;;  %1212 = vmatmul.mubr.msk.f32.gmra.mrb[14].mxu1 %vm60_vm0, %v35_v28 }
  0x29   :  { %248 = vmatprep.mubr.f32.mxu0 %v1507_v7  ;;  %326 = vmatprep.mubr.f32.mxu1 %v1507_v7 }
  0x2c   :  { %1200 = vmatmul.mubr.msk.f32.gmra.mrb[16].mxu0 %vm60_vm0, %v23_v29  ;;  %1213 = vmatmul.mubr.msk.f32.gmra.mrb[16].mxu1 %vm60_vm0, %v36_v30 }
  0x2d   :  { %254 = vmatprep.mubr.f32.mxu0 %v1507_v7  ;;  %332 = vmatprep.mubr.f32.mxu1 %v1507_v7 }
  0x30   :  { %1201 = vmatmul.mubr.msk.f32.gmra.mrb[18].mxu0 %vm60_vm0, %v24_v31  ;;  %1214 = vmatmul.mubr.msk.f32.gmra.mrb[18].mxu1 %vm60_vm0, %v37_v32 }
  0x31   :  { %260 = vmatprep.mubr.f32.mxu0 %v1507_v7  ;;  %338 = vmatprep.mubr.f32.mxu1 %v1507_v7 }
  0x34   :  { %1202 = vmatmul.mubr.msk.f32.gmra.mrb[20].mxu0 %vm60_vm0, %v25_v33  ;;  %1215 = vmatmul.mubr.msk.f32.gmra.mrb[20].mxu1 %vm60_vm0, %v38_v34 }
  0x35   :  { %266 = vmatprep.mubr.f32.mxu0 %v1507_v7  ;;  %344 = vmatprep.mubr.f32.mxu1 %v1507_v7 }
  0x38   :  { %1203 = vmatmul.mubr.msk.f32.gmra.mrb[22].mxu0 %vm60_vm0, %v26_v35  ;;  %1216 = vmatmul.mubr.msk.f32.gmra.mrb[22].mxu1 %vm60_vm0, %v39_v36 }
  0x39   :  { %272 = vmatprep.mubr.f32.mxu0 %v1507_v7 }
  0x3c   :  { %1204 = vmatmul.mubr.msk.f32.gmra.mrb[24].mxu0 %vm60_vm0, %v27_v37 }
  0xdf   :  { %v202_v45 = vpop.f32.mrb[0].mxu0  ;;  %v280_v46 = vpop.f32.mrb[0].mxu1 }
  0xe0   :  { %v1688_v47 = vadd.f32 %v202_v45, %v1683_v43  ;;  %v1691_v48 = vadd.f32 %v280_v46, %v1683_v43  ;;  %v204_v49 = vpop.f32.mrb[1].mxu0  ;;  %v282_v50 = vpop.f32.mrb[1].mxu1 }
  0xe1   :  { %v1694_v51 = vadd.f32 %v204_v49, %v1685_v44  ;;  %v1697_v52 = vadd.f32 %v282_v50, %v1685_v44 }
  0xe2   :  { %v401_v53 = vand.u32 2147483647, %v1688_v47  ;;  %v427_v54 = vand.u32 2147483647, %v1691_v48 }
  0xe3   :  { %v402_v55 = vand.u32 2147483647, %v1694_v51  ;;  %v428_v56 = vand.u32 2147483647, %v1697_v52  ;;  %v208_v59 = vpop.f32.mrb[2].mxu0  ;;  %v286_v60 = vpop.f32.mrb[2].mxu1 }
  0xe4   :  { %v451_v57 = vsub.f32 0.0, %v401_v53  ;;  %v477_v58 = vsub.f32 0.0, %v427_v54  ;;  %v1704_v63 = vadd.f32 %v208_v59, %v1683_v43  ;;  %v1707_v0 = vadd.f32 %v286_v60, %v1683_v43  ;;  %v210_v1 = vpop.f32.mrb[3].mxu0  ;;  %v288_v2 = vpop.f32.mrb[3].mxu1 }
  0xe5   :  { %v452_v61 = vsub.f32 0.0, %v402_v55  ;;  %v478_v62 = vsub.f32 0.0, %v428_v56  ;;  %v1710_v4 = vadd.f32 %v210_v1, %v1685_v44  ;;  %v1713_v5 = vadd.f32 %v288_v2, %v1685_v44 }
  0xe6   :  { %v501_v3 = vmul.f32 1.442695, %v451_v57  ;;  %v553_v6 = vmul.f32 1.442695, %v477_v58  ;;  %v403_v9 = vand.u32 2147483647, %v1704_v63 }
  0xe7   :  { %v503_v7 = vmul.f32 1.442695, %v452_v61  ;;  %v555_v8 = vmul.f32 1.442695, %v478_v62  ;;  %v429_v10 = vand.u32 2147483647, %v1707_v0 }
  0xe8   :  { %v214_v11 = vpop.f32.mrb[4].mxu0  ;;  %1233 = vpow2.f32 %v501_v3  ;;  %v404_v12 = vand.u32 2147483647, %v1710_v4  ;;  %v430_v13 = vand.u32 2147483647, %v1713_v5  ;;  %v292_v14 = vpop.f32.mrb[4].mxu1 }
  0xe9   :  { %1235 = vpow2.f32 %v503_v7  ;;  %v453_v15 = vsub.f32 0.0, %v403_v9  ;;  %v216_v16 = vpop.f32.mrb[5].mxu0  ;;  %v294_v17 = vpop.f32.mrb[5].mxu1  ;;  %v479_v23 = vsub.f32 0.0, %v429_v10  ;;  %v1722_v24 = vadd.f32 %v214_v11, %v1683_v43 }
  0xea   :  { %1237 = vpow2.f32 %v555_v8  ;;  %v454_v18 = vsub.f32 0.0, %v404_v12  ;;  %v480_v19 = vsub.f32 0.0, %v430_v13  ;;  %v1729_v29 = vadd.f32 %v292_v14, %v1683_v43 }
  0xeb   :  { %v220_v20 = vpop.f32.mrb[6].mxu0  ;;  %v1719_v21 = vpop.f32.mrb[6].mxu1  ;;  %1239 = vpow2.f32 %v553_v6  ;;  %v505_v22 = vmul.f32 1.442695, %v453_v15  ;;  %v557_v32 = vmul.f32 1.442695, %v479_v23  ;;  %v1741_v36 = vadd.f32 %v216_v16, %v1685_v44 }
  0xec   :  { %v1724_v25 = vpop.f32.mrb[7].mxu0  ;;  %v507_v26 = vmul.f32 1.442695, %v454_v18  ;;  %v559_v27 = vmul.f32 1.442695, %v480_v19  ;;  %v1726_v28 = vpop.f32.mrb[7].mxu1  ;;  %v1765_v57 = vadd.f32 %v294_v17, %v1685_v44  ;;  %v1790_v16 = vadd.f32 %v220_v20, %v1683_v43 }
  0xed   :  { %1241 = vpow2.f32 %v505_v22  ;;  %v405_v33 = vand.u32 2147483647, %v1722_v24  ;;  %v431_v38 = vand.u32 2147483647, %v1729_v29  ;;  %v406_v56 = vand.u32 2147483647, %v1741_v36 }
  0xee   :  { %1243 = vpow2.f32 %v507_v26  ;;  %v432_v15 = vand.u32 2147483647, %v1765_v57  ;;  %v1805_v20 = vadd.f32 %v1719_v21, %v1683_v43 }
  0xef   :  { %v1731_v30 = vpop.f32.mrb[8].mxu0  ;;  %v1733_v31 = vpop.f32.mrb[8].mxu1  ;;  %1245 = vpow2.f32 %v559_v27  ;;  %v455_v42 = vsub.f32 0.0, %v405_v33  ;;  %v481_v60 = vsub.f32 0.0, %v431_v38  ;;  %v1795_v22 = vsub.f32 0.0, %v406_v56 }
  0xf0   :  { %v1736_v34 = vpop.f32.mrb[9].mxu0  ;;  %v1738_v35 = vpop.f32.mrb[9].mxu1  ;;  %1247 = vpow2.f32 %v557_v32  ;;  %v482_v11 = vsub.f32 0.0, %v432_v15 }
  0xf1   :  { %v509_v3 = vmul.f32 1.442695, %v455_v42  ;;  %v561_v19 = vmul.f32 1.442695, %v481_v60 }
  0xf2   :  { %v1743_v37 = vpop.eup %1233 }
  0xf3   :  { %v1746_v39 = vpop.f32.mrb[10].mxu0  ;;  %v1748_v40 = vpop.f32.mrb[10].mxu1  ;;  %v601_v58 = vadd.f32 1.0, %v1743_v37  ;;  %v604_v18 = vmul.f32 -0.5, %v1743_v37  ;;  %v607_v38 = vand.u32 2147483647, %v1743_v37 }
  0xf4   :  { %v1750_v41 = vpop.eup %1235  ;;  %v1752_v45 = vpop.f32.mrb[11].mxu0 }
  0xf5   :  { %v1754_v46 = vpop.f32.mrb[11].mxu1  ;;  %v1756_v49 = vpop.eup %1237  ;;  %v610_v50 = vadd.f32 1.0, %v1750_v41  ;;  %v613_v13 = vmul.f32 -0.5, %v1750_v41  ;;  %v616_v60 = vand.u32 2147483647, %v1750_v41 }
  0xf6   :  { %v1759_v53 = vpop.eup %1239  ;;  %v844_v59 = vadd.f32 1.0, %v1756_v49  ;;  %v847_v27 = vmul.f32 -0.5, %v1756_v49  ;;  %v850_v10 = vand.u32 2147483647, %v1756_v49  ;;  %vm1840_vm2 = vcmp.lt.f32.partialorder %v607_v38, 0.0004427343 }
  0xf7   :  { %1249 = vlog2.f32 %v610_v50  ;;  %v1769_v61 = vpop.f32.mrb[12].mxu0  ;;  %v1771_v62 = vpop.f32.mrb[12].mxu1  ;;  %v835_v9 = vadd.f32 1.0, %v1759_v53  ;;  %v838_v42 = vmul.f32 -0.5, %v1759_v53  ;;  %v841_v1 = vand.u32 2147483647, %v1759_v53 }
  0xf8   :  { %v1775_v6 = vpop.f32.mrb[13].mxu0  ;;  %v1777_v7 = vpop.f32.mrb[13].mxu1  ;;  %1251 = vlog2.f32 %v844_v59  ;;  %v614_v59 = vadd.f32 1.0, %v613_v13  ;;  %v848_v14 = vadd.f32 1.0, %v847_v27  ;;  %vm1833_vm1 = vcmp.lt.f32.partialorder %v616_v60, 0.0004427343 }
  0xf9   :  { %v1779_v8 = vpop.eup %1241  ;;  %1253 = vlog2.f32 %v601_v58  ;;  %vm1844_vm3 = vcmp.lt.f32.partialorder %v850_v10, 0.0004427343  ;;  %vm1866_vm4 = vcmp.lt.f32.partialorder %v841_v1, 0.0004427343  ;;  %v511_v1 = vmul.f32 1.442695, %v1795_v22 }
  0xfa   :  { %v1784_v12 = vpop.eup %1243  ;;  %1255 = vpow2.f32 %v509_v3  ;;  %v619_v50 = vadd.f32 1.0, %v1779_v8  ;;  %v605_v3 = vadd.f32 1.0, %v604_v18  ;;  %v622_v55 = vmul.f32 -0.5, %v1779_v8 }
  0xfb   :  { %v1792_v17 = vpop.eup %1245  ;;  %v1797_v23 = vpop.f32.mrb[14].mxu0  ;;  %v628_v32 = vadd.f32 1.0, %v1784_v12  ;;  %1257 = vlog2.f32 %v835_v9  ;;  %v615_v27 = vmul.f32 %v1750_v41, %v614_v59  ;;  %v849_v38 = vmul.f32 %v1756_v49, %v848_v14 }
  0xfc   :  { %2564 = vst [vmem:[#allocation5_spill] sm:$0xff] %v1797_v23  ;;  %v1799_v26 = vpop.f32.mrb[14].mxu1  ;;  %v1807_v33 = vpop.f32.mrb[15].mxu0  ;;  %v862_v21 = vadd.f32 1.0, %v1792_v17  ;;  %v1838_v13 = vmul.f32 %v1743_v37, %v605_v3  ;;  %v634_v3 = vand.u32 2147483647, %v1784_v12 }
  0xfd   :  { %2565 = vst [vmem:[#allocation6_spill] sm:$0xff] %v1799_v26  ;;  %2566 = vst [vmem:[#allocation7_spill] sm:$0xff] %v1807_v33  ;;  %v1812_v56 = vpop.f32.mrb[15].mxu1  ;;  %v1814_v58 = vpop.eup %1247  ;;  %1259 = vlog2.f32 %v628_v32 }
  0xfe   :  { %2567 = vst [vmem:[#allocation8_spill] sm:$0xff] %v1812_v56  ;;  %1261 = vpow2.f32 %v561_v19  ;;  %v853_v18 = vadd.f32 1.0, %v1814_v58  ;;  %v631_v56 = vmul.f32 -0.5, %v1784_v12  ;;  %v856_v14 = vmul.f32 -0.5, %v1814_v58 }
  0xff   :  { %v1820_v9 = vpop.f32.mrb[16].mxu0  ;;  %v1822_v54 = vpop.f32.mrb[16].mxu1  ;;  %1263 = vlog2.f32 %v862_v21  ;;  %vm1886_vm5 = vcmp.lt.f32.partialorder %v634_v3, 0.0004427343 }
 0x100   :  { %2568 = vst [vmem:[#allocation9_spill] sm:$0xff] %v1820_v9  ;;  %2569 = vst [vmem:[#allocation10_spill] sm:$0xff] %v1822_v54  ;;  %v1825_v2 = vpop.f32.mrb[17].mxu0  ;;  %1265 = vlog2.f32 %v619_v50  ;;  %v1830_v19 = vpop.f32.mrb[17].mxu1  ;;  %v839_v9 = vadd.f32 1.0, %v838_v42  ;;  %v623_v42 = vadd.f32 1.0, %v622_v55 }
 0x101   :  { %2570 = vst [vmem:[#allocation11_spill] sm:$0xff] %v1825_v2  ;;  %v1250_v32 = vpop.eup %1249  ;;  %2571 = vst [vmem:[#allocation12_spill] sm:$0xff] %v1830_v19  ;;  %v2581_v55 = vmax.f32 %v1694_v51, 0.0  ;;  %1267 = vlog2.f32 %v853_v18  ;;  %v868_v51 = vand.u32 2147483647, %v1792_v17  ;;  %v2584_v18 = vmax.f32 %v1697_v52, 0.0 }
 0x102   :  { %v612_v33 = vmul.f32 0.6931472, %v1250_v32  ;;  %v1252_v21 = vpop.eup %1251  ;;  %v865_v32 = vmul.f32 -0.5, %v1792_v17 }
 0x103   :  { %v1849_v41 = vpop.f32.mrb[18].mxu0  ;;  %v1851_v59 = vpop.f32.mrb[18].mxu1  ;;  %v846_v37 = vmul.f32 0.6931472, %v1252_v21  ;;  %vm1902_vm7 = vcmp.lt.f32.partialorder %v868_v51, 0.0004427343 }
 0x104   :  { %2578 = vst [vmem:[#allocation13_spill] sm:$0xff] %v1849_v41  ;;  %2579 = vst [vmem:[#allocation14_spill] sm:$0xff] %v1851_v59  ;;  %v618_v60 = vsel %vm1833_vm1, %v615_v27, %v612_v33  ;;  %v1857_v19 = vpop.f32.mrb[19].mxu0  ;;  %v1859_v10 = vpop.f32.mrb[19].mxu1  ;;  %v625_v41 = vand.u32 2147483647, %v1779_v8  ;;  %v1884_v27 = vmul.f32 %v1779_v8, %v623_v42 }
 0x105   :  { %2580 = vst [vmem:[#allocation15_spill] sm:$0xff] %v1859_v10  ;;  %v1254_v54 = vpop.eup %1253  ;;  %v1052_v26 = vadd.f32 %v618_v60, %v2581_v55  ;;  %v632_v59 = vadd.f32 1.0, %v631_v56  ;;  %v852_v49 = vsel %vm1844_vm3, %v849_v38, %v846_v37  ;;  %v866_v21 = vadd.f32 1.0, %v865_v32 }
 0x106   :  { %v1864_v23 = vpop.eup %1255  ;;  %v1078_v56 = vadd.f32 %v852_v49, %v2584_v18  ;;  %v603_v37 = vmul.f32 0.6931472, %v1254_v54  ;;  %v840_v38 = vmul.f32 %v1759_v53, %v839_v9  ;;  %vm1896_vm6 = vcmp.lt.f32.partialorder %v625_v41, 0.0004427343 }
 0x107   :  { %v1258_v15 = vpop.eup %1257  ;;  %1269 = vrcp.f32 %v1052_v26  ;;  %v1878_v60 = vpop.f32.mrb[20].mxu0  ;;  %v633_v53 = vmul.f32 %v1784_v12, %v632_v59  ;;  %v637_v8 = vadd.f32 1.0, %v1864_v23  ;;  %v563_v49 = vmul.f32 1.442695, %v482_v11 }
 0x108   :  { %v1880_v55 = vpop.f32.mrb[20].mxu1  ;;  %v1260_v2 = vpop.eup %1259  ;;  %1271 = vrcp.f32 %v1078_v56  ;;  %v837_v42 = vmul.f32 0.6931472, %v1258_v15  ;;  %v609_v51 = vsel %vm1840_vm2, %v1838_v13, %v603_v37  ;;  %v2594_v11 = vmax.f32 %v1710_v4, 0.0 }
 0x109   :  { %v1890_v52 = vpop.f32.mrb[21].mxu0  ;;  %v1892_v26 = vpop.f32.mrb[21].mxu1  ;;  %v630_v54 = vmul.f32 0.6931472, %v1260_v2  ;;  %1273 = vpow2.f32 %v511_v1  ;;  %v2593_v2 = vand.u32 2147483647, %v1790_v16  ;;  %v1929_v1 = vadd.f32 %v1726_v28, %v1685_v44 }
 0x10a   :  { %2587 = vst [vmem:[#allocation16_spill] sm:$0xff] %v1890_v52  ;;  %2588 = vst [vmem:[#allocation17_spill] sm:$0xff] %v1892_v26  ;;  %v1894_v22 = vpop.eup %1261  ;;  %v867_v26 = vmul.f32 %v1792_v17, %v866_v21  ;;  %1275 = vpow2.f32 %v563_v49  ;;  %v433_v10 = vand.u32 2147483647, %v1805_v20  ;;  %v1925_v21 = vadd.f32 %v1724_v25, %v1685_v44 }
 0x10b   :  { %v1264_v9 = vpop.eup %1263  ;;  %v636_v41 = vsel %vm1886_vm5, %v633_v53, %v630_v54  ;;  %v457_v12 = vsub.f32 0.0, %v2593_v2  ;;  %v1911_v59 = vpop.f32.mrb[22].mxu0  ;;  %1277 = vlog2.f32 %v637_v8  ;;  %v2595_v4 = vmax.f32 %v1713_v5, 0.0 }
 0x10c   :  { %v1266_v18 = vpop.eup %1265  ;;  %v864_v56 = vmul.f32 0.6931472, %v1264_v9  ;;  %v1913_v52 = vpop.f32.mrb[22].mxu1  ;;  %v1054_v15 = vadd.f32 %v636_v41, %v2594_v11  ;;  %v483_v54 = vsub.f32 0.0, %v433_v10  ;;  %v408_v25 = vand.u32 2147483647, %v1925_v21 }
 0x10d   :  { %v1931_v50 = vpop.f32.mrb[23].mxu0  ;;  %v621_v13 = vmul.f32 0.6931472, %v1266_v18  ;;  %v1268_v53 = vpop.eup %1267  ;;  %v513_v8 = vmul.f32 1.442695, %v457_v12  ;;  %v1940_v9 = vadd.f32 %v1731_v30, %v1683_v43  ;;  %v2596_v28 = vmax.f32 %v1688_v47, 0.0 }
 0x10e   :  { %v870_v17 = vsel %vm1902_vm7, %v867_v26, %v864_v56  ;;  %1279 = vrcp.f32 %v1054_v15  ;;  %v843_v26 = vsel %vm1866_vm4, %v840_v38, %v837_v42  ;;  %v857_v49 = vadd.f32 1.0, %v856_v14 }
 0x10f   :  { %v1080_v37 = vadd.f32 %v870_v17, %v2595_v4  ;;  %v1051_v3 = vadd.f32 %v609_v51, %v2596_v28  ;;  %v871_v5 = vadd.f32 1.0, %v1894_v22  ;;  %v379_v41 = vmax.f32 %v1707_v0, 0.0 }
 0x110   :  { %v565_v56 = vmul.f32 1.442695, %v483_v54  ;;  %v458_v33 = vsub.f32 0.0, %v408_v25  ;;  %v434_v38 = vand.u32 2147483647, %v1929_v1  ;;  %v2597_v42 = vmax.f32 %v1691_v48, 0.0 }
 0x111   :  { %1281 = vrcp.f32 %v1080_v37  ;;  %v1270_v18 = vpop.eup %1269  ;;  %v627_v47 = vsel %vm1896_vm6, %v1884_v27, %v621_v13  ;;  %v855_v30 = vmul.f32 0.6931472, %v1268_v53  ;;  %v409_v15 = vand.u32 2147483647, %v1940_v9 }
 0x112   :  { %v1077_v2 = vadd.f32 %v843_v26, %v2597_v42  ;;  %v1126_v12 = vmul.f32 %v1270_v18, %v1051_v3  ;;  %v1272_v14 = vpop.eup %1271  ;;  %1283 = vpow2.f32 %v513_v8  ;;  %v515_v51 = vmul.f32 1.442695, %v458_v33  ;;  %v1982_v33 = vpop.f32.mrb[23].mxu1 }
 0x113   :  { %v484_v11 = vsub.f32 0.0, %v434_v38  ;;  %v1953_v0 = vpop.eup %1273  ;;  %v858_v17 = vmul.f32 %v1814_v58, %v857_v49  ;;  %v2598_v48 = vand.u32 2147483647, %v1814_v58  ;;  %1285 = vlog2.f32 %v871_v5 }
 0x114   :  { %1151 = vst [vmem:[#allocation2] sm:$0xff] %v1126_v12  ;;  %v1139_v10 = vmul.f32 %v1272_v14, %v1077_v2  ;;  %v640_v27 = vmul.f32 -0.5, %v1864_v23  ;;  %v646_v32 = vadd.f32 1.0, %v1953_v0  ;;  %1287 = vpow2.f32 %v565_v56  ;;  %v1968_v37 = vpop.eup %1275 }
 0x115   :  { %vm1958_vm8 = vcmp.lt.f32.partialorder %v2598_v48, 0.0004427343  ;;  %v1966_v13 = vadd.f32 %v1736_v34, %v1685_v44  ;;  %v2601_v54 = vmax.f32 %v1704_v63, 0.0  ;;  %1289 = vpow2.f32 %v515_v51  ;;  %v1278_v8 = vpop.eup %1277 }
 0x116   :  { %1164 = vst [vmem:[#allocation2 + $0x68] sm:$0xff] %v1139_v10  ;;  %v861_v53 = vsel %vm1958_vm8, %v858_v17, %v855_v30  ;;  %v567_v26 = vmul.f32 1.442695, %v484_v11  ;;  %1291 = vlog2.f32 %v646_v32  ;;  %v880_v25 = vadd.f32 1.0, %v1968_v37 }
 0x117   :  { %v1053_v58 = vadd.f32 %v627_v47, %v2601_v54  ;;  %v459_v28 = vsub.f32 0.0, %v409_v15  ;;  %v1977_v34 = vadd.f32 %v1733_v31, %v1683_v43  ;;  %v643_v49 = vand.u32 2147483647, %v1864_v23 }
 0x118   :  { %v1280_v3 = vpop.eup %1279  ;;  %v874_v63 = vmul.f32 -0.5, %v1894_v22  ;;  %1293 = vpow2.f32 %v567_v26  ;;  %v1079_v5 = vadd.f32 %v861_v53, %v379_v41  ;;  %v410_v56 = vand.u32 2147483647, %v1966_v13  ;;  %v2000_v26 = vpop.f32.mrb[24].mxu0 }
 0x119   :  { %v1127_v18 = vmul.f32 %v1280_v3, %v1053_v58  ;;  %1295 = vlog2.f32 %v880_v25  ;;  %v355_v42 = vmax.f32 %v1722_v24, 0.0  ;;  %v381_v2 = vmax.f32 %v1729_v29, 0.0 }
 0x11a   :  { %v356_v31 = vmax.f32 %v1741_v36, 0.0  ;;  %v649_v12 = vmul.f32 -0.5, %v1953_v0  ;;  %v641_v30 = vadd.f32 1.0, %v640_v27  ;;  %v517_v14 = vmul.f32 1.442695, %v459_v28 }
 0x11b   :  { %v1282_v38 = vpop.eup %1281  ;;  %1152 = vst [vmem:[#allocation2 + $0x8] sm:$0xff] %v1127_v18  ;;  %v435_v41 = vand.u32 2147483647, %v1977_v34  ;;  %v875_v51 = vadd.f32 1.0, %v874_v63  ;;  %v877_v11 = vand.u32 2147483647, %v1894_v22  ;;  %v2007_v3 = vadd.f32 %v1738_v35, %v1685_v44 }
 0x11c   :  { %v1140_v47 = vmul.f32 %v1282_v38, %v1079_v5  ;;  %v883_v15 = vmul.f32 -0.5, %v1968_v37  ;;  %v460_v10 = vsub.f32 0.0, %v410_v56  ;;  %v1991_v17 = vpop.eup %1283  ;;  %v639_v48 = vmul.f32 0.6931472, %v1278_v8 }
 0x11d   :  { %vm1993_vm9 = vcmp.lt.f32.partialorder %v643_v49, 0.0004427343  ;;  %v382_v4 = vmax.f32 %v1765_v57, 0.0  ;;  %v357_v27 = vmax.f32 %v1790_v16, 0.0  ;;  %v1286_v32 = vpop.eup %1285  ;;  %v650_v54 = vadd.f32 1.0, %v649_v12  ;;  %v2009_v57 = vpop.f32.mrb[25].mxu0 }
 0x11e   :  { %1165 = vst [vmem:[#allocation2 + $0x70] sm:$0xff] %v1140_v47  ;;  %v652_v58 = vand.u32 2147483647, %v1953_v0  ;;  %v519_v53 = vmul.f32 1.442695, %v460_v10  ;;  %v2002_v25 = vpop.eup %1287  ;;  %v642_v28 = vmul.f32 %v1864_v23, %v641_v30  ;;  %1297 = vpow2.f32 %v517_v14 }
 0x11f   :  { %v485_v8 = vsub.f32 0.0, %v435_v41  ;;  %v2011_v49 = vpop.eup %1289  ;;  %v876_v63 = vmul.f32 %v1894_v22, %v875_v51  ;;  %vm2014_vm10 = vcmp.lt.f32.partialorder %v877_v11, 0.0004427343  ;;  %v884_v18 = vadd.f32 1.0, %v883_v15 }
 0x120   :  { %v655_v56 = vadd.f32 1.0, %v1991_v17  ;;  %1299 = vpow2.f32 %v519_v53  ;;  %v1292_v23 = vpop.eup %1291  ;;  %v645_v38 = vsel %vm1993_vm9, %v642_v28, %v639_v48  ;;  %v886_v35 = vand.u32 2147483647, %v1968_v37 }
 0x121   :  { %v383_v12 = vmax.f32 %v1805_v20, 0.0  ;;  %v664_v47 = vadd.f32 1.0, %v2011_v49  ;;  %v873_v22 = vmul.f32 0.6931472, %v1286_v32  ;;  %v648_v14 = vmul.f32 0.6931472, %v1292_v23 }
 0x122   :  { %v2024_v30 = vpop.eup %1293  ;;  %v651_v41 = vmul.f32 %v1953_v0, %v650_v54  ;;  %vm653_vm11 = vcmp.lt.f32.partialorder %v652_v58, 0.0004427343  ;;  %v569_v15 = vmul.f32 1.442695, %v485_v8  ;;  %v436_v10 = vand.u32 2147483647, %v2007_v3 }
 0x123   :  { %v1296_v51 = vpop.eup %1295  ;;  %1301 = vlog2.f32 %v664_v47  ;;  %v898_v11 = vadd.f32 1.0, %v2024_v30  ;;  %v885_v53 = vmul.f32 %v1968_v37, %v884_v18  ;;  %vm887_vm12 = vcmp.lt.f32.partialorder %v886_v35, 0.0004427343 }
 0x124   :  { %v654_v48 = vsel %vm653_vm11, %v651_v41, %v648_v14  ;;  %v882_v36 = vmul.f32 0.6931472, %v1296_v51  ;;  %1303 = vlog2.f32 %v655_v56  ;;  %v658_v32 = vmul.f32 -0.5, %v1991_v17 }
 0x125   :  { %v1056_v28 = vadd.f32 %v654_v48, %v356_v31  ;;  %1305 = vlog2.f32 %v898_v11  ;;  %v889_v0 = vadd.f32 1.0, %v2002_v25  ;;  %v667_v54 = vmul.f32 -0.5, %v2011_v49 }
 0x126   :  { %v888_v23 = vsel %vm887_vm12, %v885_v53, %v882_v36  ;;  %v2035_v58 = vadd.f32 %v1746_v39, %v1683_v43  ;;  %v358_v47 = vmax.f32 %v1925_v21, 0.0  ;;  %v486_v37 = vsub.f32 0.0, %v436_v10 }
 0x127   :  { %1307 = vrcp.f32 %v1056_v28  ;;  %v1082_v8 = vadd.f32 %v888_v23, %v382_v4  ;;  %v1055_v31 = vadd.f32 %v645_v38, %v355_v42  ;;  %v384_v18 = vmax.f32 %v1929_v1, 0.0 }
 0x128   :  { %v901_v56 = vmul.f32 -0.5, %v2024_v30  ;;  %1309 = vpow2.f32 %v569_v15  ;;  %v2042_v35 = vpop.eup %1297  ;;  %v879_v14 = vsel %vm2014_vm10, %v876_v63, %v873_v22  ;;  %v659_v39 = vadd.f32 1.0, %v658_v32 }
 0x129   :  { %1311 = vrcp.f32 %v1082_v8  ;;  %v359_v4 = vmax.f32 %v1940_v9, 0.0  ;;  %v668_v21 = vadd.f32 1.0, %v667_v54  ;;  %v670_v24 = vand.u32 2147483647, %v2011_v49 }
 0x12a   :  { %v2047_v41 = vpop.eup %1299  ;;  %1313 = vlog2.f32 %v889_v0  ;;  %v411_v1 = vand.u32 2147483647, %v2035_v58  ;;  %v904_v42 = vand.u32 2147483647, %v2024_v30  ;;  %v360_v38 = vmax.f32 %v1966_v13, 0.0 }
 0x12b   :  { %v682_v51 = vadd.f32 1.0, %v2047_v41  ;;  %v571_v5 = vmul.f32 1.442695, %v486_v37  ;;  %v1081_v63 = vadd.f32 %v879_v14, %v381_v2  ;;  %v661_v22 = vand.u32 2147483647, %v1991_v17 }
 0x12c   :  { %v892_v11 = vmul.f32 -0.5, %v2002_v25  ;;  %v902_v15 = vadd.f32 1.0, %v901_v56  ;;  %v895_v48 = vand.u32 2147483647, %v2002_v25  ;;  %v673_v36 = vadd.f32 1.0, %v2042_v35 }
 0x12d   :  { %v1302_v10 = vpop.eup %1301  ;;  %1315 = vlog2.f32 %v682_v51  ;;  %v2062_v53 = vadd.f32 %v1748_v40, %v1683_v43  ;;  %v2065_v32 = vmul.f32 %v1991_v17, %v659_v39  ;;  %v669_v2 = vmul.f32 %v2011_v49, %v668_v21 }
 0x12e   :  { %v1304_v28 = vpop.eup %1303  ;;  %v666_v29 = vmul.f32 0.6931472, %v1302_v10  ;;  %vm671_vm13 = vcmp.lt.f32.partialorder %v670_v24, 0.0004427343  ;;  %vm2068_vm14 = vcmp.lt.f32.partialorder %v904_v42, 0.0004427343  ;;  %1317 = vpow2.f32 %v571_v5 }
 0x12f   :  { %v1306_v23 = vpop.eup %1305  ;;  %v461_v54 = vsub.f32 0.0, %v411_v1  ;;  %v2074_v8 = vadd.f32 %v1752_v45, %v1685_v44  ;;  %vm2076_vm15 = vcmp.lt.f32.partialorder %v661_v22, 0.0004427343  ;;  %v903_v49 = vmul.f32 %v2024_v30, %v902_v15 }
 0x130   :  { %v672_v17 = vsel %vm671_vm13, %v669_v2, %v666_v29  ;;  %v900_v37 = vmul.f32 0.6931472, %v1306_v23  ;;  %v685_v56 = vmul.f32 -0.5, %v2047_v41  ;;  %1319 = vlog2.f32 %v673_v36 }
 0x131   :  { %v1308_v14 = vpop.eup %1307  ;;  %v1058_v39 = vadd.f32 %v672_v17, %v358_v47  ;;  %v437_v21 = vand.u32 2147483647, %v2062_v53  ;;  %v412_v24 = vand.u32 2147483647, %v2074_v8  ;;  %v2090_v51 = vadd.f32 %v1754_v46, %v1685_v44 }
 0x132   :  { %v2084_v1 = vpop.eup %1309  ;;  %v1128_v45 = vmul.f32 %v1308_v14, %v1055_v31  ;;  %v906_v42 = vsel %vm2068_vm14, %v903_v49, %v900_v37  ;;  %v2094_v30 = vadd.f32 %v1769_v61, %v1683_v43  ;;  %v893_v5 = vadd.f32 1.0, %v892_v11 }
 0x133   :  { %v1312_v47 = vpop.eup %1311  ;;  %1321 = vrcp.f32 %v1058_v39  ;;  %v1084_v22 = vadd.f32 %v906_v42, %v384_v18  ;;  %v521_v15 = vmul.f32 1.442695, %v461_v54  ;;  %v686_v31 = vadd.f32 1.0, %v685_v56 }
 0x134   :  { %v1314_v10 = vpop.eup %1313  ;;  %1153 = vst [vmem:[#allocation2 + $0x10] sm:$0xff] %v1128_v45  ;;  %v1141_v36 = vmul.f32 %v1312_v47, %v1081_v63  ;;  %v462_v29 = vsub.f32 0.0, %v412_v24  ;;  %v438_v2 = vand.u32 2147483647, %v2090_v51  ;;  %v657_v23 = vmul.f32 0.6931472, %v1304_v28 }
 0x135   :  { %1323 = vrcp.f32 %v1084_v22  ;;  %v688_v46 = vand.u32 2147483647, %v2047_v41  ;;  %v413_v0 = vand.u32 2147483647, %v2094_v30  ;;  %vm2099_vm0 = vcmp.lt.f32.partialorder %v895_v48, 0.0004427343 }
 0x136   :  { %1166 = vst [vmem:[#allocation2 + $0x78] sm:$0xff] %v1141_v36  ;;  %v907_v18 = vadd.f32 1.0, %v2084_v1  ;;  %v487_v11 = vsub.f32 0.0, %v437_v21  ;;  %v523_v54 = vmul.f32 1.442695, %v462_v29  ;;  %v894_v37 = vmul.f32 %v2002_v25, %v893_v5 }
 0x137   :  { %v1316_v63 = vpop.eup %1315  ;;  %v891_v17 = vmul.f32 0.6931472, %v1314_v10  ;;  %1325 = vpow2.f32 %v521_v15  ;;  %v488_v28 = vsub.f32 0.0, %v438_v2  ;;  %v687_v56 = vmul.f32 %v2047_v41, %v686_v31 }
 0x138   :  { %v684_v49 = vmul.f32 0.6931472, %v1316_v63  ;;  %1327 = vpow2.f32 %v523_v54  ;;  %v2108_v48 = vadd.f32 %v1771_v62, %v1683_v43  ;;  %v2110_v14 = vpop.eup %1317  ;;  %v663_v39 = vsel %vm2076_vm15, %v2065_v32, %v657_v23 }
 0x139   :  { %v676_v21 = vmul.f32 -0.5, %v2042_v35  ;;  %vm689_vm1 = vcmp.lt.f32.partialorder %v688_v46, 0.0004427343  ;;  %v463_v25 = vsub.f32 0.0, %v413_v0  ;;  %1329 = vlog2.f32 %v907_v18 }
 0x13a   :  { %v690_v24 = vsel %vm689_vm1, %v687_v56, %v684_v49  ;;  %v916_v45 = vadd.f32 1.0, %v2110_v14  ;;  %v573_v41 = vmul.f32 1.442695, %v487_v11  ;;  %v1320_v42 = vpop.eup %1319  ;;  %v897_v62 = vsel %vm2099_vm0, %v894_v37, %v891_v17 }
 0x13b   :  { %v1060_v47 = vadd.f32 %v690_v24, %v360_v38  ;;  %v575_v5 = vmul.f32 1.442695, %v488_v28  ;;  %v2123_v32 = vadd.f32 %v1775_v6, %v1685_v44  ;;  %v1057_v40 = vadd.f32 %v663_v39, %v357_v27 }
 0x13c   :  { %1331 = vlog2.f32 %v916_v45  ;;  %v439_v22 = vand.u32 2147483647, %v2108_v48  ;;  %v2130_v15 = vadd.f32 %v1777_v7, %v1685_v44  ;;  %v677_v36 = vadd.f32 1.0, %v676_v21 }
 0x13d   :  { %v1322_v10 = vpop.eup %1321  ;;  %v679_v13 = vand.u32 2147483647, %v2042_v35  ;;  %1333 = vrcp.f32 %v1060_v47  ;;  %v525_v38 = vmul.f32 1.442695, %v463_v25  ;;  %v1083_v6 = vadd.f32 %v897_v62, %v383_v12 }
 0x13e   :  { %v1129_v31 = vmul.f32 %v1322_v10, %v1057_v40  ;;  %1335 = vpow2.f32 %v573_v41  ;;  %v489_v16 = vsub.f32 0.0, %v439_v22  ;;  %v675_v29 = vmul.f32 0.6931472, %v1320_v42 }
 0x13f   :  { %v1324_v27 = vpop.eup %1323  ;;  %v919_v2 = vmul.f32 -0.5, %v2110_v14  ;;  %1337 = vpow2.f32 %v575_v5  ;;  %v414_v7 = vand.u32 2147483647, %v2123_v32  ;;  %v385_v46 = vmax.f32 %v1977_v34, 0.0 }
 0x140   :  { %1154 = vst [vmem:[#allocation2 + $0x18] sm:$0xff] %v1129_v31  ;;  %v1142_v23 = vmul.f32 %v1324_v27, %v1083_v6  ;;  %v577_v0 = vmul.f32 1.442695, %v489_v16  ;;  %v440_v61 = vand.u32 2147483647, %v2130_v15  ;;  %v678_v20 = vmul.f32 %v2042_v35, %v677_v36 }
 0x141   :  { %v2139_v18 = vpop.eup %1325  ;;  %v910_v12 = vmul.f32 -0.5, %v2084_v1  ;;  %1339 = vpow2.f32 %v525_v38  ;;  %v464_v11 = vsub.f32 0.0, %v414_v7  ;;  %vm2145_vm2 = vcmp.lt.f32.partialorder %v679_v13, 0.0004427343 }
 0x142   :  { %v2143_v54 = vpop.eup %1327  ;;  %1167 = vst [vmem:[#allocation2 + $0x80] sm:$0xff] %v1142_v23  ;;  %v913_v17 = vand.u32 2147483647, %v2084_v1  ;;  %v386_v37 = vmax.f32 %v2007_v3, 0.0  ;;  %v490_v28 = vsub.f32 0.0, %v440_v61  ;;  %v681_v49 = vsel %vm2145_vm2, %v678_v20, %v675_v29  ;;  %v2614_v3 = vld [vmem:[#allocation5_spill] sm:$0xff] }
 0x143   :  { %v920_v35 = vadd.f32 1.0, %v919_v2  ;;  %v361_v56 = vmax.f32 %v2035_v58, 0.0  ;;  %v700_v39 = vadd.f32 1.0, %v2143_v54  ;;  %v1330_v21 = vpop.eup %1329  ;;  %v922_v25 = vand.u32 2147483647, %v2110_v14 }
 0x144   :  { %v691_v24 = vadd.f32 1.0, %v2139_v18  ;;  %1341 = vpow2.f32 %v577_v0  ;;  %v527_v45 = vmul.f32 1.442695, %v464_v11  ;;  %v911_v41 = vadd.f32 1.0, %v910_v12  ;;  %v2617_v11 = vld [vmem:[#allocation6_spill] sm:$0xff] }
 0x145   :  { %1343 = vlog2.f32 %v700_v39  ;;  %v579_v42 = vmul.f32 1.442695, %v490_v28  ;;  %v2159_v62 = vadd.f32 %v2614_v3, %v1683_v43  ;;  %v1059_v5 = vadd.f32 %v681_v49, %v359_v4 }
 0x146   :  { %v1332_v47 = vpop.eup %1331  ;;  %vm2163_vm3 = vcmp.lt.f32.partialorder %v913_v17, 0.0004427343  ;;  %v694_v22 = vmul.f32 -0.5, %v2139_v18  ;;  %1345 = vpow2.f32 %v527_v45  ;;  %v909_v36 = vmul.f32 0.6931472, %v1330_v21 }
 0x147   :  { %v1334_v10 = vpop.eup %1333  ;;  %v918_v13 = vmul.f32 0.6931472, %v1332_v47  ;;  %v921_v38 = vmul.f32 %v2110_v14, %v920_v35  ;;  %1347 = vpow2.f32 %v579_v42  ;;  %vm923_vm4 = vcmp.lt.f32.partialorder %v922_v25, 0.0004427343 }
 0x148   :  { %v2169_v6 = vpop.eup %1335  ;;  %v1130_v31 = vmul.f32 %v1334_v10, %v1059_v5  ;;  %1349 = vlog2.f32 %v691_v24  ;;  %v703_v9 = vmul.f32 -0.5, %v2143_v54  ;;  %v912_v16 = vmul.f32 %v2084_v1, %v911_v41 }
 0x149   :  { %v2172_v4 = vpop.eup %1337  ;;  %v924_v27 = vsel %vm923_vm4, %v921_v38, %v918_v13  ;;  %v387_v29 = vmax.f32 %v2062_v53, 0.0  ;;  %v415_v2 = vand.u32 2147483647, %v2159_v62  ;;  %v695_v14 = vadd.f32 1.0, %v694_v22  ;;  %v2620_v13 = vld [vmem:[#allocation7_spill] sm:$0xff] }
 0x14a   :  { %1155 = vst [vmem:[#allocation2 + $0x20] sm:$0xff] %v1130_v31  ;;  %v1086_v7 = vadd.f32 %v924_v27, %v386_v37  ;;  %v362_v23 = vmax.f32 %v2074_v8, 0.0  ;;  %v934_v0 = vadd.f32 1.0, %v2172_v4  ;;  %v915_v20 = vsel %vm2163_vm3, %v912_v16, %v909_v36  ;;  %v2621_v31 = vld [vmem:[#allocation8_spill] sm:$0xff] }
 0x14b   :  { %v2179_v61 = vpop.eup %1339  ;;  %v925_v12 = vadd.f32 1.0, %v2169_v6  ;;  %v928_v1 = vmul.f32 -0.5, %v2169_v6  ;;  %v2187_v63 = vadd.f32 %v2617_v11, %v1683_v43  ;;  %v697_v17 = vand.u32 2147483647, %v2139_v18 }
 0x14c   :  { %1351 = vrcp.f32 %v1086_v7  ;;  %v704_v37 = vadd.f32 1.0, %v703_v9  ;;  %v706_v8 = vand.u32 2147483647, %v2143_v54  ;;  %v388_v28 = vmax.f32 %v2090_v51, 0.0 }
 0x14d   :  { %1353 = vlog2.f32 %v934_v0  ;;  %v363_v49 = vmax.f32 %v2094_v30, 0.0  ;;  %v465_v35 = vsub.f32 0.0, %v415_v2  ;;  %v1085_v21 = vadd.f32 %v915_v20, %v385_v46 }
 0x14e   :  { %v2193_v39 = vpop.eup %1341  ;;  %v2198_v25 = vmul.f32 %v2139_v18, %v695_v14  ;;  %v709_v24 = vadd.f32 1.0, %v2179_v61  ;;  %v364_v45 = vmax.f32 %v2123_v32, 0.0  ;;  %1355 = vlog2.f32 %v925_v12 }
 0x14f   :  { %v1344_v41 = vpop.eup %1343  ;;  %v929_v42 = vadd.f32 1.0, %v928_v1  ;;  %v390_v3 = vmax.f32 %v2130_v15, 0.0  ;;  %v441_v47 = vand.u32 2147483647, %v2187_v63  ;;  %vm2206_vm5 = vcmp.lt.f32.partialorder %v697_v17, 0.0004427343 }
 0x150   :  { %v2204_v5 = vpop.eup %1345  ;;  %v702_v34 = vmul.f32 0.6931472, %v1344_v41  ;;  %v705_v46 = vmul.f32 %v2143_v54, %v704_v37  ;;  %vm707_vm6 = vcmp.lt.f32.partialorder %v706_v8, 0.0004427343  ;;  %v937_v18 = vmul.f32 -0.5, %v2172_v4 }
 0x151   :  { %v2212_v22 = vpop.eup %1347  ;;  %v718_v10 = vadd.f32 1.0, %v2204_v5  ;;  %v529_v36 = vmul.f32 1.442695, %v465_v35  ;;  %v2217_v38 = vadd.f32 %v2620_v13, %v1685_v44  ;;  %v2221_v9 = vadd.f32 %v2621_v31, %v1685_v44 }
 0x152   :  { %v1350_v16 = vpop.eup %1349  ;;  %v708_v27 = vsel %vm707_vm6, %v705_v46, %v702_v34  ;;  %v940_v54 = vand.u32 2147483647, %v2172_v4  ;;  %1357 = vlog2.f32 %v709_v24  ;;  %v952_v2 = vadd.f32 1.0, %v2212_v22  ;;  %v2624_v34 = vld [vmem:[#allocation9_spill] sm:$0xff] }
 0x153   :  { %v931_v7 = vand.u32 2147483647, %v2169_v6  ;;  %v1062_v14 = vadd.f32 %v708_v27, %v362_v23  ;;  %1359 = vlog2.f32 %v718_v10  ;;  %v491_v0 = vsub.f32 0.0, %v441_v47 }
 0x154   :  { %v2227_v20 = vmul.f32 %v2169_v6, %v929_v42  ;;  %v938_v12 = vadd.f32 1.0, %v937_v18  ;;  %v943_v1 = vadd.f32 1.0, %v2193_v39  ;;  %1361 = vlog2.f32 %v952_v2 }
 0x155   :  { %v693_v11 = vmul.f32 0.6931472, %v1350_v16  ;;  %1363 = vrcp.f32 %v1062_v14  ;;  %v721_v17 = vmul.f32 -0.5, %v2204_v5  ;;  %v416_v37 = vand.u32 2147483647, %v2217_v38 }
 0x156   :  { %v1352_v8 = vpop.eup %1351  ;;  %vm2232_vm7 = vcmp.lt.f32.partialorder %v940_v54, 0.0004427343  ;;  %v955_v23 = vmul.f32 -0.5, %v2212_v22  ;;  %1365 = vpow2.f32 %v529_v36  ;;  %v442_v6 = vand.u32 2147483647, %v2221_v9 }
 0x157   :  { %v1354_v24 = vpop.eup %1353  ;;  %v1143_v41 = vmul.f32 %v1352_v8, %v1085_v21  ;;  %v581_v42 = vmul.f32 1.442695, %v491_v0  ;;  %v466_v47 = vsub.f32 0.0, %v416_v37  ;;  %v2240_v46 = vadd.f32 %v2624_v34, %v1683_v43  ;;  %v2632_v34 = vld [vmem:[#allocation11_spill] sm:$0xff] }
 0x158   :  { %v936_v18 = vmul.f32 0.6931472, %v1354_v24  ;;  %v939_v10 = vmul.f32 %v2172_v4, %v938_v12  ;;  %1367 = vlog2.f32 %v943_v1  ;;  %v492_v13 = vsub.f32 0.0, %v442_v6  ;;  %v1356_v31 = vpop.eup %1355 }
 0x159   :  { %1168 = vst [vmem:[#allocation2 + $0x88] sm:$0xff] %v1143_v41  ;;  %v699_v36 = vsel %vm2206_vm5, %v2198_v25, %v693_v11  ;;  %vm2246_vm8 = vcmp.lt.f32.partialorder %v931_v7, 0.0004427343  ;;  %v722_v21 = vadd.f32 1.0, %v721_v17  ;;  %v724_v27 = vand.u32 2147483647, %v2204_v5 }
 0x15a   :  { %v531_v54 = vmul.f32 1.442695, %v466_v47  ;;  %v942_v2 = vsel %vm2232_vm7, %v939_v10, %v936_v18  ;;  %v956_v4 = vadd.f32 1.0, %v955_v23  ;;  %v958_v14 = vand.u32 2147483647, %v2212_v22  ;;  %v2627_v17 = vld [vmem:[#allocation10_spill] sm:$0xff] }
 0x15b   :  { %v417_v0 = vand.u32 2147483647, %v2240_v46  ;;  %v1088_v40 = vadd.f32 %v942_v2, %v388_v28  ;;  %v712_v25 = vmul.f32 -0.5, %v2179_v61  ;;  %1369 = vpow2.f32 %v581_v42 }
 0x15c   :  { %v583_v7 = vmul.f32 1.442695, %v492_v13  ;;  %v1358_v12 = vpop.eup %1357  ;;  %v1061_v1 = vadd.f32 %v699_v36, %v361_v56  ;;  %v927_v11 = vmul.f32 0.6931472, %v1356_v31  ;;  %1371 = vpow2.f32 %v531_v54  ;;  %v2633_v31 = vld [vmem:[#allocation12_spill] sm:$0xff] }
 0x15d   :  { %v2262_v37 = vadd.f32 %v2627_v17, %v1683_v43  ;;  %v1360_v8 = vpop.eup %1359  ;;  %1373 = vrcp.f32 %v1088_v40  ;;  %v946_v35 = vmul.f32 -0.5, %v2193_v39  ;;  %vm2265_vm9 = vcmp.lt.f32.partialorder %v724_v27, 0.0004427343 }
 0x15e   :  { %v467_v28 = vsub.f32 0.0, %v417_v0  ;;  %v1362_v23 = vpop.eup %1361  ;;  %v720_v6 = vmul.f32 0.6931472, %v1360_v8  ;;  %v723_v58 = vmul.f32 %v2204_v5, %v722_v21  ;;  %v957_v56 = vmul.f32 %v2212_v22, %v956_v4 }
 0x15f   :  { %vm2271_vm10 = vcmp.lt.f32.partialorder %v958_v14, 0.0004427343  ;;  %v1364_v41 = vpop.eup %1363  ;;  %v954_v42 = vmul.f32 0.6931472, %v1362_v23  ;;  %1375 = vpow2.f32 %v583_v7  ;;  %v2277_v18 = vadd.f32 %v2632_v34, %v1685_v44 }
 0x160   :  { %v533_v47 = vmul.f32 1.442695, %v467_v28  ;;  %v2279_v10 = vpop.eup %1365  ;;  %v1131_v13 = vmul.f32 %v1364_v41, %v1061_v1  ;;  %v726_v5 = vsel %vm2265_vm9, %v723_v58, %v720_v6  ;;  %v443_v22 = vand.u32 2147483647, %v2262_v37 }
 0x161   :  { %v2286_v36 = vadd.f32 %v2633_v31, %v1685_v44  ;;  %v713_v21 = vadd.f32 1.0, %v712_v25  ;;  %v715_v27 = vand.u32 2147483647, %v2179_v61  ;;  %v1064_v54 = vadd.f32 %v726_v5, %v364_v45  ;;  %v2639_v5 = vld [vmem:[#allocation14_spill] sm:$0xff] }
 0x162   :  { %v960_v2 = vsel %vm2271_vm10, %v957_v56, %v954_v42  ;;  %v1368_v4 = vpop.eup %1367  ;;  %v933_v14 = vsel %vm2246_vm8, %v2227_v20, %v927_v11  ;;  %1156 = vst [vmem:[#allocation2 + $0x28] sm:$0xff] %v1131_v13  ;;  %1377 = vpow2.f32 %v533_v47  ;;  %v493_v40 = vsub.f32 0.0, %v443_v22 }
 0x163   :  { %v1090_v0 = vadd.f32 %v960_v2, %v390_v3  ;;  %v947_v25 = vadd.f32 1.0, %v946_v35  ;;  %1379 = vrcp.f32 %v1064_v54  ;;  %v727_v7 = vadd.f32 1.0, %v2279_v10  ;;  %v2634_v3 = vld [vmem:[#allocation13_spill] sm:$0xff] }
 0x164   :  { %v418_v32 = vand.u32 2147483647, %v2277_v18  ;;  %v949_v45 = vand.u32 2147483647, %v2193_v39  ;;  %v585_v1 = vmul.f32 1.442695, %v493_v40  ;;  %v2306_v8 = vadd.f32 %v2634_v3, %v1683_v43 }
 0x165   :  { %1381 = vrcp.f32 %v1090_v0  ;;  %v444_v17 = vand.u32 2147483647, %v2286_v36  ;;  %v2302_v16 = vpop.eup %1369  ;;  %v711_v20 = vmul.f32 0.6931472, %v1358_v12  ;;  %v945_v11 = vmul.f32 0.6931472, %v1368_v4 }
 0x166   :  { %v468_v15 = vsub.f32 0.0, %v418_v32  ;;  %v2308_v35 = vpop.eup %1371  ;;  %v1087_v51 = vadd.f32 %v933_v14, %v387_v29  ;;  %v714_v28 = vmul.f32 %v2179_v61, %v713_v21  ;;  %vm2313_vm11 = vcmp.lt.f32.partialorder %v715_v27, 0.0004427343 }
 0x167   :  { %v494_v6 = vsub.f32 0.0, %v444_v17  ;;  %v1374_v58 = vpop.eup %1373  ;;  %v948_v12 = vmul.f32 %v2193_v39, %v947_v25  ;;  %1383 = vlog2.f32 %v727_v7  ;;  %v736_v56 = vadd.f32 1.0, %v2308_v35 }
 0x168   :  { %v535_v24 = vmul.f32 1.442695, %v468_v15  ;;  %v1144_v41 = vmul.f32 %v1374_v58, %v1087_v51  ;;  %vm2319_vm12 = vcmp.lt.f32.partialorder %v949_v45, 0.0004427343  ;;  %1385 = vpow2.f32 %v585_v1 }
 0x169   :  { %v587_v53 = vmul.f32 1.442695, %v494_v6  ;;  %v2323_v29 = vpop.eup %1375  ;;  %v717_v61 = vsel %vm2313_vm11, %v714_v28, %v711_v20  ;;  %v951_v47 = vsel %vm2319_vm12, %v948_v12, %v945_v11  ;;  %1387 = vlog2.f32 %v736_v56 }
 0x16a   :  { %v419_v39 = vand.u32 2147483647, %v2306_v8  ;;  %1169 = vst [vmem:[#allocation2 + $0x90] sm:$0xff] %v1144_v41  ;;  %v961_v34 = vadd.f32 1.0, %v2302_v16  ;;  %v970_v13 = vadd.f32 1.0, %v2323_v29  ;;  %1389 = vpow2.f32 %v535_v24 }
 0x16b   :  { %v2334_v22 = vadd.f32 %v2639_v5, %v1683_v43  ;;  %v389_v31 = vmax.f32 %v2108_v48, 0.0  ;;  %1391 = vpow2.f32 %v587_v53  ;;  %v1063_v27 = vadd.f32 %v717_v61, %v363_v49  ;;  %v2640_v5 = vld [vmem:[#allocation15_spill] sm:$0xff] }
 0x16c   :  { %v2337_v21 = vpop.eup %1377  ;;  %v739_v54 = vmul.f32 -0.5, %v2308_v35  ;;  %1393 = vlog2.f32 %v970_v13  ;;  %v469_v14 = vsub.f32 0.0, %v419_v39  ;;  %v2345_v48 = vadd.f32 %v1857_v19, %v1685_v44 }
 0x16d   :  { %v1380_v2 = vpop.eup %1379  ;;  %v1089_v4 = vadd.f32 %v951_v47, %v389_v31  ;;  %1395 = vlog2.f32 %v961_v34  ;;  %v445_v25 = vand.u32 2147483647, %v2334_v22  ;;  %v730_v32 = vmul.f32 -0.5, %v2279_v10 }
 0x16e   :  { %v1132_v40 = vmul.f32 %v1380_v2, %v1063_v27  ;;  %v973_v30 = vmul.f32 -0.5, %v2323_v29  ;;  %v740_v49 = vadd.f32 1.0, %v739_v54  ;;  %v745_v45 = vadd.f32 1.0, %v2337_v21 }
 0x16f   :  { %v1382_v0 = vpop.eup %1381  ;;  %v366_v17 = vmax.f32 %v2217_v38, 0.0  ;;  %v742_v20 = vand.u32 2147483647, %v2308_v35  ;;  %v537_v11 = vmul.f32 1.442695, %v469_v14  ;;  %v392_v3 = vmax.f32 %v2221_v9, 0.0 }
 0x170   :  { %v1145_v7 = vmul.f32 %v1382_v0, %v1089_v4  ;;  %1157 = vst [vmem:[#allocation2 + $0x30] sm:$0xff] %v1132_v40  ;;  %v733_v19 = vand.u32 2147483647, %v2279_v10  ;;  %v495_v51 = vsub.f32 0.0, %v445_v25  ;;  %v420_v28 = vand.u32 2147483647, %v2345_v48 }
 0x171   :  { %v1384_v1 = vpop.eup %1383  ;;  %v731_v6 = vadd.f32 1.0, %v730_v32  ;;  %v964_v58 = vmul.f32 -0.5, %v2302_v16  ;;  %v967_v12 = vand.u32 2147483647, %v2302_v16  ;;  %v974_v56 = vadd.f32 1.0, %v973_v30 }
 0x172   :  { %1170 = vst [vmem:[#allocation2 + $0x98] sm:$0xff] %v1145_v7  ;;  %v2352_v15 = vpop.eup %1385  ;;  %v741_v41 = vmul.f32 %v2308_v35, %v740_v49  ;;  %v976_v42 = vand.u32 2147483647, %v2323_v29  ;;  %1397 = vlog2.f32 %v745_v45  ;;  %vm743_vm13 = vcmp.lt.f32.partialorder %v742_v20, 0.0004427343 }
 0x173   :  { %v1388_v23 = vpop.eup %1387  ;;  %1399 = vpow2.f32 %v537_v11  ;;  %v470_v61 = vsub.f32 0.0, %v420_v28  ;;  %v589_v13 = vmul.f32 1.442695, %v495_v51  ;;  %v2369_v31 = vadd.f32 %v2640_v5, %v1685_v44 }
 0x174   :  { %v2359_v38 = vpop.eup %1389  ;;  %v738_v24 = vmul.f32 0.6931472, %v1388_v23  ;;  %v975_v54 = vmul.f32 %v2323_v29, %v974_v56  ;;  %v729_v4 = vmul.f32 0.6931472, %v1384_v1  ;;  %v965_v14 = vadd.f32 1.0, %v964_v58 }
 0x175   :  { %v2363_v53 = vpop.eup %1391  ;;  %v754_v9 = vadd.f32 1.0, %v2359_v38  ;;  %vm977_vm14 = vcmp.lt.f32.partialorder %v976_v42, 0.0004427343  ;;  %v979_v40 = vadd.f32 1.0, %v2352_v15  ;;  %v539_v25 = vmul.f32 1.442695, %v470_v61 }
 0x176   :  { %v1394_v47 = vpop.eup %1393  ;;  %v744_v39 = vsel %vm743_vm13, %v741_v41, %v738_v24  ;;  %v988_v34 = vadd.f32 1.0, %v2363_v53  ;;  %v757_v32 = vmul.f32 -0.5, %v2359_v38  ;;  %v446_v30 = vand.u32 2147483647, %v2369_v31 }
 0x177   :  { %v1066_v35 = vadd.f32 %v744_v39, %v366_v17  ;;  %v972_v27 = vmul.f32 0.6931472, %v1394_v47  ;;  %1401 = vlog2.f32 %v754_v9  ;;  %v1396_v2 = vpop.eup %1395  ;;  %v365_v49 = vmax.f32 %v2159_v62, 0.0 }
 0x178   :  { %1403 = vlog2.f32 %v988_v34  ;;  %v963_v29 = vmul.f32 0.6931472, %v1396_v2  ;;  %v991_v45 = vmul.f32 -0.5, %v2363_v53  ;;  %v732_v1 = vmul.f32 %v2279_v10, %v731_v6 }
 0x179   :  { %1405 = vrcp.f32 %v1066_v35  ;;  %v978_v0 = vsel %vm977_vm14, %v975_v54, %v972_v27  ;;  %v391_v17 = vmax.f32 %v2187_v63, 0.0  ;;  %v496_v20 = vsub.f32 0.0, %v446_v30 }
 0x17a   :  { %v1092_v7 = vadd.f32 %v978_v0, %v392_v3  ;;  %1407 = vpow2.f32 %v589_v13  ;;  %vm2379_vm15 = vcmp.lt.f32.partialorder %v733_v19, 0.0004427343  ;;  %v966_v3 = vmul.f32 %v2302_v16, %v965_v14  ;;  %v2645_v13 = vld [vmem:[#allocation16_spill] sm:$0xff] }
 0x17b   :  { %1409 = vpow2.f32 %v539_v25  ;;  %v368_v51 = vmax.f32 %v2277_v18, 0.0  ;;  %v735_v28 = vsel %vm2379_vm15, %v732_v1, %v729_v4  ;;  %vm2387_vm0 = vcmp.lt.f32.partialorder %v967_v12, 0.0004427343 }
 0x17c   :  { %1411 = vrcp.f32 %v1092_v7  ;;  %v1398_v62 = vpop.eup %1397  ;;  %v758_v63 = vadd.f32 1.0, %v757_v32  ;;  %v591_v10 = vmul.f32 1.442695, %v496_v20  ;;  %v969_v19 = vsel %vm2387_vm0, %v966_v3, %v963_v29  ;;  %v2646_v32 = vld [vmem:[#allocation17_spill] sm:$0xff] }
 0x17d   :  { %1413 = vlog2.f32 %v979_v40  ;;  %v2391_v6 = vpop.eup %1399  ;;  %v760_v16 = vand.u32 2147483647, %v2359_v38  ;;  %v992_v58 = vadd.f32 1.0, %v991_v45  ;;  %v2398_v18 = vadd.f32 %v1878_v60, %v1683_v43 }
 0x17e   :  { %v394_v56 = vmax.f32 %v2286_v36, 0.0  ;;  %v994_v12 = vand.u32 2147483647, %v2363_v53  ;;  %1415 = vpow2.f32 %v591_v10  ;;  %v2404_v24 = vadd.f32 %v1880_v55, %v1683_v43 }
 0x17f   :  { %v1065_v42 = vadd.f32 %v735_v28, %v365_v49  ;;  %v748_v9 = vmul.f32 -0.5, %v2337_v21  ;;  %v751_v61 = vand.u32 2147483647, %v2337_v21  ;;  %v982_v47 = vmul.f32 -0.5, %v2352_v15 }
 0x180   :  { %v1091_v60 = vadd.f32 %v969_v19, %v391_v17  ;;  %v759_v36 = vmul.f32 %v2359_v38, %v758_v63  ;;  %v2412_v5 = vadd.f32 %v2645_v13, %v1685_v44  ;;  %vm761_vm1 = vcmp.lt.f32.partialorder %v760_v16, 0.0004427343 }
 0x181   :  { %v1402_v41 = vpop.eup %1401  ;;  %v993_v27 = vmul.f32 %v2363_v53, %v992_v58  ;;  %v421_v54 = vand.u32 2147483647, %v2398_v18  ;;  %vm995_vm2 = vcmp.lt.f32.partialorder %v994_v12, 0.0004427343  ;;  %v447_v0 = vand.u32 2147483647, %v2404_v24 }
 0x182   :  { %v1404_v39 = vpop.eup %1403  ;;  %v756_v34 = vmul.f32 0.6931472, %v1402_v41  ;;  %v422_v7 = vand.u32 2147483647, %v2412_v5  ;;  %v2424_v30 = vadd.f32 %v2646_v32, %v1685_v44  ;;  %v749_v49 = vadd.f32 1.0, %v748_v9 }
 0x183   :  { %v1406_v35 = vpop.eup %1405  ;;  %v990_v55 = vmul.f32 0.6931472, %v1404_v39  ;;  %v763_v45 = vadd.f32 1.0, %v2391_v6  ;;  %v471_v11 = vsub.f32 0.0, %v421_v54  ;;  %v985_v28 = vand.u32 2147483647, %v2352_v15 }
 0x184   :  { %v2416_v2 = vpop.eup %1407  ;;  %v1133_v4 = vmul.f32 %v1406_v35, %v1065_v42  ;;  %v762_v14 = vsel %vm761_vm1, %v759_v36, %v756_v34  ;;  %v472_v3 = vsub.f32 0.0, %v422_v7  ;;  %v747_v63 = vmul.f32 0.6931472, %v1398_v62 }
 0x185   :  { %v2419_v40 = vpop.eup %1409  ;;  %v1068_v38 = vadd.f32 %v762_v14, %v368_v51  ;;  %v996_v25 = vsel %vm995_vm2, %v993_v27, %v990_v55  ;;  %v983_v51 = vadd.f32 1.0, %v982_v47  ;;  %v997_v23 = vadd.f32 1.0, %v2416_v2 }
 0x186   :  { %v1412_v53 = vpop.eup %1411  ;;  %1158 = vst [vmem:[#allocation2 + $0x38] sm:$0xff] %v1133_v4  ;;  %v1094_v29 = vadd.f32 %v996_v25, %v394_v56  ;;  %v772_v1 = vadd.f32 1.0, %v2419_v40  ;;  %v497_v10 = vsub.f32 0.0, %v447_v0  ;;  %v448_v19 = vand.u32 2147483647, %v2424_v30 }
 0x187   :  { %v1414_v17 = vpop.eup %1413  ;;  %v1146_v20 = vmul.f32 %v1412_v53, %v1091_v60  ;;  %1417 = vrcp.f32 %v1068_v38  ;;  %vm2433_vm3 = vcmp.lt.f32.partialorder %v751_v61, 0.0004427343  ;;  %v543_v12 = vmul.f32 1.442695, %v472_v3 }
 0x188   :  { %1419 = vrcp.f32 %v1094_v29  ;;  %v2431_v16 = vpop.eup %1415  ;;  %v981_v56 = vmul.f32 0.6931472, %v1414_v17  ;;  %v750_v41 = vmul.f32 %v2337_v21, %v749_v49  ;;  %v541_v9 = vmul.f32 1.442695, %v471_v11 }
 0x189   :  { %1171 = vst [vmem:[#allocation2 + $0xa0] sm:$0xff] %v1146_v20  ;;  %1421 = vlog2.f32 %v772_v1  ;;  %v1006_v42 = vadd.f32 1.0, %v2431_v16  ;;  %v984_v62 = vmul.f32 %v2352_v15, %v983_v51  ;;  %v775_v47 = vmul.f32 -0.5, %v2419_v40 }
 0x18a   :  { %1423 = vlog2.f32 %v763_v45  ;;  %v498_v39 = vsub.f32 0.0, %v448_v19  ;;  %v753_v61 = vsel %vm2433_vm3, %v750_v41, %v747_v63  ;;  %vm986_vm4 = vcmp.lt.f32.partialorder %v985_v28, 0.0004427343 }
 0x18b   :  { %1425 = vlog2.f32 %v997_v23  ;;  %v593_v60 = vmul.f32 1.442695, %v497_v10  ;;  %v367_v34 = vmax.f32 %v2240_v46, 0.0  ;;  %v987_v36 = vsel %vm986_vm4, %v984_v62, %v981_v56 }
 0x18c   :  { %1427 = vlog2.f32 %v1006_v42  ;;  %v595_v21 = vmul.f32 1.442695, %v498_v39  ;;  %v393_v13 = vmax.f32 %v2262_v37, 0.0  ;;  %v2447_v15 = vadd.f32 %v1911_v59, %v1683_v43 }
 0x18d   :  { %1429 = vpow2.f32 %v543_v12  ;;  %v1067_v35 = vadd.f32 %v753_v61, %v367_v34  ;;  %v776_v55 = vadd.f32 1.0, %v775_v47  ;;  %v1009_v27 = vmul.f32 -0.5, %v2431_v16 }
 0x18e   :  { %1431 = vpow2.f32 %v541_v9  ;;  %v1093_v4 = vadd.f32 %v987_v36, %v393_v13  ;;  %v778_v14 = vand.u32 2147483647, %v2419_v40  ;;  %v2453_v46 = vadd.f32 %v1931_v50, %v1685_v44 }
 0x18f   :  { %1433 = vpow2.f32 %v595_v21  ;;  %v766_v38 = vmul.f32 -0.5, %v2391_v6  ;;  %v769_v59 = vand.u32 2147483647, %v2391_v6  ;;  %v370_v32 = vmax.f32 %v2345_v48, 0.0 }
 0x190   :  { %1435 = vpow2.f32 %v593_v60  ;;  %v423_v53 = vand.u32 2147483647, %v2447_v15  ;;  %v2461_v49 = vadd.f32 %v1982_v33, %v1685_v44  ;;  %v777_v50 = vmul.f32 %v2419_v40, %v776_v55 }
 0x191   :  { %v1418_v54 = vpop.eup %1417  ;;  %v1010_v45 = vadd.f32 1.0, %v1009_v27  ;;  %v2466_v1 = vadd.f32 %v1913_v52, %v1683_v43  ;;  %vm779_vm5 = vcmp.lt.f32.partialorder %v778_v14, 0.0004427343  ;;  %v1012_v48 = vand.u32 2147483647, %v2431_v16 }
 0x192   :  { %v1420_v37 = vpop.eup %1419  ;;  %v1134_v0 = vmul.f32 %v1418_v54, %v1067_v35  ;;  %v424_v20 = vand.u32 2147483647, %v2453_v46  ;;  %v767_v3 = vadd.f32 1.0, %v766_v38  ;;  %vm2470_vm6 = vcmp.lt.f32.partialorder %v769_v59, 0.0004427343 }
 0x193   :  { %v1422_v25 = vpop.eup %1421  ;;  %v1147_v7 = vmul.f32 %v1420_v37, %v1093_v4  ;;  %v396_v40 = vmax.f32 %v2369_v31, 0.0  ;;  %v1000_v52 = vmul.f32 -0.5, %v2416_v2  ;;  %v473_v63 = vsub.f32 0.0, %v423_v53 }
 0x194   :  { %1159 = vst [vmem:[#allocation2 + $0x40] sm:$0xff] %v1134_v0  ;;  %v774_v29 = vmul.f32 0.6931472, %v1422_v25  ;;  %v1424_v17 = vpop.eup %1423  ;;  %v450_v10 = vand.u32 2147483647, %v2461_v49  ;;  %v1011_v12 = vmul.f32 %v2431_v16, %v1010_v45  ;;  %v474_v9 = vsub.f32 0.0, %v424_v20 }
 0x195   :  { %1172 = vst [vmem:[#allocation2 + $0xa8] sm:$0xff] %v1147_v7  ;;  %v1426_v11 = vpop.eup %1425  ;;  %v765_v58 = vmul.f32 0.6931472, %v1424_v17  ;;  %v449_v41 = vand.u32 2147483647, %v2466_v1  ;;  %v768_v47 = vmul.f32 %v2391_v6, %v767_v3  ;;  %v2490_v60 = vadd.f32 %v2000_v26, %v1683_v43 }
 0x196   :  { %v780_v51 = vsel %vm779_vm5, %v777_v50, %v774_v29  ;;  %v1428_v28 = vpop.eup %1427  ;;  %vm1013_vm7 = vcmp.lt.f32.partialorder %v1012_v48, 0.0004427343  ;;  %v1003_v39 = vand.u32 2147483647, %v2416_v2  ;;  %v545_v36 = vmul.f32 1.442695, %v473_v63 }
 0x197   :  { %v1070_v23 = vadd.f32 %v780_v51, %v370_v32  ;;  %v2477_v19 = vpop.eup %1429  ;;  %v1008_v56 = vmul.f32 0.6931472, %v1428_v28  ;;  %v500_v21 = vsub.f32 0.0, %v450_v10  ;;  %v1001_v13 = vadd.f32 1.0, %v1000_v52 }
 0x198   :  { %v2481_v42 = vpop.eup %1431  ;;  %v790_v31 = vadd.f32 1.0, %v2477_v19  ;;  %v499_v27 = vsub.f32 0.0, %v449_v41  ;;  %v771_v6 = vsel %vm2470_vm6, %v768_v47, %v765_v58  ;;  %v999_v54 = vmul.f32 0.6931472, %v1426_v11 }
 0x199   :  { %1437 = vrcp.f32 %v1070_v23  ;;  %v2484_v62 = vpop.eup %1433  ;;  %v1014_v61 = vsel %vm1013_vm7, %v1011_v12, %v1008_v56  ;;  %v781_v35 = vadd.f32 1.0, %v2481_v42  ;;  %v547_v4 = vmul.f32 1.442695, %v474_v9 }
 0x19a   :  { %v2492_v16 = vpop.eup %1435  ;;  %v1096_v34 = vadd.f32 %v1014_v61, %v396_v40  ;;  %1439 = vlog2.f32 %v790_v31  ;;  %v1024_v55 = vadd.f32 1.0, %v2484_v62  ;;  %v793_v26 = vmul.f32 -0.5, %v2477_v19 }
 0x19b   :  { %v1015_v43 = vadd.f32 1.0, %v2492_v16  ;;  %v425_v14 = vand.u32 2147483647, %v2490_v60  ;;  %v369_v37 = vmax.f32 %v2306_v8, 0.0  ;;  %v599_v0 = vmul.f32 1.442695, %v500_v21 }
 0x19c   :  { %1441 = vrcp.f32 %v1096_v34  ;;  %v2504_v38 = vadd.f32 %v2009_v57, %v1685_v44  ;;  %v1002_v59 = vmul.f32 %v2416_v2, %v1001_v13  ;;  %v597_v25 = vmul.f32 1.442695, %v499_v27 }
 0x19d   :  { %1443 = vlog2.f32 %v1024_v55  ;;  %v1069_v7 = vadd.f32 %v771_v6, %v369_v37  ;;  %vm1004_vm8 = vcmp.lt.f32.partialorder %v1003_v39, 0.0004427343  ;;  %v1027_v32 = vmul.f32 -0.5, %v2484_v62 }
 0x19e   :  { %1445 = vpow2.f32 %v545_v36  ;;  %v1005_v53 = vsel %vm1004_vm8, %v1002_v59, %v999_v54  ;;  %v794_v29 = vadd.f32 1.0, %v793_v26  ;;  %v475_v50 = vsub.f32 0.0, %v425_v14 }
 0x19f   :  { %1447 = vlog2.f32 %v781_v35  ;;  %v395_v45 = vmax.f32 %v2334_v22, 0.0  ;;  %v796_v17 = vand.u32 2147483647, %v2477_v19  ;;  %v426_v44 = vand.u32 2147483647, %v2504_v38 }
 0x1a0   :  { %1449 = vpow2.f32 %v547_v4  ;;  %v1028_v20 = vadd.f32 1.0, %v1027_v32  ;;  %v795_v33 = vmul.f32 %v2477_v19, %v794_v29  ;;  %v1030_v51 = vand.u32 2147483647, %v2484_v62 }
 0x1a1   :  { %1451 = vlog2.f32 %v1015_v43  ;;  %v1095_v48 = vadd.f32 %v1005_v53, %v395_v45  ;;  %v476_v11 = vsub.f32 0.0, %v426_v44  ;;  %v549_v40 = vmul.f32 1.442695, %v475_v50 }
 0x1a2   :  { %1453 = vpow2.f32 %v599_v0  ;;  %v784_v22 = vmul.f32 -0.5, %v2481_v42  ;;  %v372_v52 = vmax.f32 %v2412_v5, 0.0  ;;  %vm797_vm9 = vcmp.lt.f32.partialorder %v796_v17, 0.0004427343 }
 0x1a3   :  { %v1438_v8 = vpop.eup %1437  ;;  %1455 = vpow2.f32 %v597_v25  ;;  %v551_v23 = vmul.f32 1.442695, %v476_v11  ;;  %v1029_v31 = vmul.f32 %v2484_v62, %v1028_v20  ;;  %v1018_v9 = vmul.f32 -0.5, %v2492_v16 }
 0x1a4   :  { %v1135_v57 = vmul.f32 %v1438_v8, %v1069_v7  ;;  %v1440_v2 = vpop.eup %1439  ;;  %v398_v47 = vmax.f32 %v2424_v30, 0.0  ;;  %vm1031_vm10 = vcmp.lt.f32.partialorder %v1030_v51, 0.0004427343  ;;  %v785_v39 = vadd.f32 1.0, %v784_v22 }
 0x1a5   :  { %v792_v3 = vmul.f32 0.6931472, %v1440_v2  ;;  %1457 = vpow2.f32 %v551_v23  ;;  %v787_v36 = vand.u32 2147483647, %v2481_v42  ;;  %v1019_v27 = vadd.f32 1.0, %v1018_v9 }
 0x1a6   :  { %1160 = vst [vmem:[#allocation2 + $0x48] sm:$0xff] %v1135_v57  ;;  %v1442_v28 = vpop.eup %1441  ;;  %1459 = vpow2.f32 %v549_v40  ;;  %v786_v30 = vmul.f32 %v2481_v42, %v785_v39  ;;  %v1021_v54 = vand.u32 2147483647, %v2492_v16  ;;  %v371_v37 = vmax.f32 %v2398_v18, 0.0 }
 0x1a7   :  { %v1444_v63 = vpop.eup %1443  ;;  %v1148_v10 = vmul.f32 %v1442_v28, %v1095_v48  ;;  %v798_v58 = vsel %vm797_vm9, %v795_v33, %v792_v3  ;;  %vm788_vm11 = vcmp.lt.f32.partialorder %v787_v36, 0.0004427343  ;;  %v1020_v0 = vmul.f32 %v2492_v16, %v1019_v27 }
 0x1a8   :  { %v2515_v56 = vpop.eup %1445  ;;  %v1072_v12 = vadd.f32 %v798_v58, %v372_v52  ;;  %v1026_v41 = vmul.f32 0.6931472, %v1444_v63  ;;  %vm1022_vm12 = vcmp.lt.f32.partialorder %v1021_v54, 0.0004427343  ;;  %v397_v8 = vmax.f32 %v2404_v24, 0.0 }
 0x1a9   :  { %v1448_v19 = vpop.eup %1447  ;;  %1173 = vst [vmem:[#allocation2 + $0xb0] sm:$0xff] %v1148_v10  ;;  %v799_v43 = vadd.f32 1.0, %v2515_v56  ;;  %v802_v51 = vmul.f32 -0.5, %v2515_v56  ;;  %v374_v24 = vmax.f32 %v2453_v46, 0.0  ;;  %v400_v10 = vmax.f32 %v2461_v49, 0.0 }
 0x1aa   :  { %v1450_v5 = vpop.eup %1449  ;;  %1461 = vrcp.f32 %v1072_v12  ;;  %v1032_v61 = vsel %vm1031_vm10, %v1029_v31, %v1026_v41  ;;  %v783_v62 = vmul.f32 0.6931472, %v1448_v19  ;;  %v805_v39 = vand.u32 2147483647, %v2515_v56 }
 0x1ab   :  { %v1452_v34 = vpop.eup %1451  ;;  %v1098_v21 = vadd.f32 %v1032_v61, %v398_v47  ;;  %v808_v13 = vadd.f32 1.0, %v1450_v5  ;;  %v811_v59 = vmul.f32 -0.5, %v1450_v5  ;;  %v814_v44 = vand.u32 2147483647, %v1450_v5 }
 0x1ac   :  { %v1454_v35 = vpop.eup %1453  ;;  %v1017_v4 = vmul.f32 0.6931472, %v1452_v34  ;;  %v789_v26 = vsel %vm788_vm11, %v786_v30, %v783_v62  ;;  %v803_v47 = vadd.f32 1.0, %v802_v51  ;;  %v376_v62 = vmax.f32 %v2504_v38, 0.0 }
 0x1ad   :  { %v2521_v55 = vpop.eup %1455  ;;  %1463 = vrcp.f32 %v1098_v21  ;;  %v1042_v6 = vadd.f32 1.0, %v1454_v35  ;;  %v1045_v7 = vmul.f32 -0.5, %v1454_v35  ;;  %v1071_v32 = vadd.f32 %v789_v26, %v371_v37 }
 0x1ae   :  { %1465 = vlog2.f32 %v808_v13  ;;  %v1033_v14 = vadd.f32 1.0, %v2521_v55  ;;  %v1023_v53 = vsel %vm1022_vm12, %v1020_v0, %v1017_v4  ;;  %v812_v17 = vadd.f32 1.0, %v811_v59 }
 0x1af   :  { %1467 = vlog2.f32 %v1042_v6  ;;  %v1458_v25 = vpop.eup %1457  ;;  %v1097_v18 = vadd.f32 %v1023_v53, %v397_v8  ;;  %v1046_v16 = vadd.f32 1.0, %v1045_v7  ;;  %v1048_v48 = vand.u32 2147483647, %v1454_v35 }
 0x1b0   :  { %v2529_v42 = vpop.eup %1459  ;;  %1469 = vlog2.f32 %v799_v43  ;;  %v826_v29 = vadd.f32 1.0, %v1458_v25  ;;  %v829_v3 = vmul.f32 -0.5, %v1458_v25  ;;  %v813_v28 = vmul.f32 %v1450_v5, %v812_v17 }
 0x1b1   :  { %1471 = vlog2.f32 %v1033_v14  ;;  %v817_v57 = vadd.f32 1.0, %v2529_v42  ;;  %vm815_vm13 = vcmp.lt.f32.partialorder %v814_v44, 0.0004427343  ;;  %v1047_v52 = vmul.f32 %v1454_v35, %v1046_v16 }
 0x1b2   :  { %1473 = vlog2.f32 %v826_v29  ;;  %v1036_v23 = vmul.f32 -0.5, %v2521_v55  ;;  %vm1049_vm14 = vcmp.lt.f32.partialorder %v1048_v48, 0.0004427343  ;;  %v830_v41 = vadd.f32 1.0, %v829_v3 }
 0x1b3   :  { %1475 = vlog2.f32 %v817_v57  ;;  %v832_v9 = vand.u32 2147483647, %v1458_v25  ;;  %v1039_v36 = vand.u32 2147483647, %v2521_v55  ;;  %v820_v35 = vmul.f32 -0.5, %v2529_v42 }
 0x1b4   :  { %v1462_v50 = vpop.eup %1461  ;;  %v1037_v61 = vadd.f32 1.0, %v1036_v23  ;;  %v831_v49 = vmul.f32 %v1458_v25, %v830_v41  ;;  %v804_v27 = vmul.f32 %v2515_v56, %v803_v47  ;;  %vm806_vm0 = vcmp.lt.f32.partialorder %v805_v39, 0.0004427343 }
 0x1b5   :  { %v1136_v45 = vmul.f32 %v1462_v50, %v1071_v32  ;;  %vm833_vm15 = vcmp.lt.f32.partialorder %v832_v9, 0.0004427343  ;;  %vm1040_vm1 = vcmp.lt.f32.partialorder %v1039_v36, 0.0004427343  ;;  %v373_v26 = vmax.f32 %v2447_v15, 0.0 }
 0x1b6   :  { %v1038_v30 = vmul.f32 %v2521_v55, %v1037_v61  ;;  %v821_v37 = vadd.f32 1.0, %v820_v35  ;;  %v399_v0 = vmax.f32 %v2466_v1, 0.0  ;;  %v823_v38 = vand.u32 2147483647, %v2529_v42 }
 0x1b7   :  { %v1464_v2 = vpop.eup %1463  ;;  %1161 = vst [vmem:[#allocation2 + $0x50] sm:$0xff] %v1136_v45  ;;  %v375_v15 = vmax.f32 %v2490_v60, 0.0 }
 0x1b8   :  { %v1466_v20 = vpop.eup %1465  ;;  %v1149_v11 = vmul.f32 %v1464_v2, %v1097_v18  ;;  %v822_v55 = vmul.f32 %v2529_v42, %v821_v37  ;;  %vm824_vm2 = vcmp.lt.f32.partialorder %v823_v38, 0.0004427343 }
 0x1b9   :  { %v1468_v33 = vpop.eup %1467  ;;  %v810_v40 = vmul.f32 0.6931472, %v1466_v20 }
 0x1ba   :  { %1174 = vst [vmem:[#allocation2 + $0xb8] sm:$0xff] %v1149_v11  ;;  %v1044_v22 = vmul.f32 0.6931472, %v1468_v33  ;;  %v1470_v31 = vpop.eup %1469 }
 0x1bb   :  { %v816_v63 = vsel %vm815_vm13, %v813_v28, %v810_v40  ;;  %v1472_v46 = vpop.eup %1471  ;;  %v801_v34 = vmul.f32 0.6931472, %v1470_v31 }
 0x1bc   :  { %v1074_v58 = vadd.f32 %v816_v63, %v374_v24  ;;  %v1050_v12 = vsel %vm1049_vm14, %v1047_v52, %v1044_v22  ;;  %v1474_v5 = vpop.eup %1473  ;;  %v1035_v13 = vmul.f32 0.6931472, %v1472_v46 }
 0x1bd   :  { %v1100_v19 = vadd.f32 %v1050_v12, %v400_v10  ;;  %v828_v21 = vmul.f32 0.6931472, %v1474_v5  ;;  %v1476_v4 = vpop.eup %1475  ;;  %v807_v43 = vsel %vm806_vm0, %v804_v27, %v801_v34 }
 0x1be   :  { %1477 = vrcp.f32 %v1074_v58  ;;  %v1041_v14 = vsel %vm1040_vm1, %v1038_v30, %v1035_v13  ;;  %v1073_v59 = vadd.f32 %v807_v43, %v373_v26  ;;  %v819_v25 = vmul.f32 0.6931472, %v1476_v4 }
 0x1bf   :  { %1479 = vrcp.f32 %v1100_v19  ;;  %v834_v6 = vsel %vm833_vm15, %v831_v49, %v828_v21  ;;  %v1099_v7 = vadd.f32 %v1041_v14, %v399_v0 }
 0x1c0   :  { %v1076_v54 = vadd.f32 %v834_v6, %v376_v62  ;;  %v825_v50 = vsel %vm824_vm2, %v822_v55, %v819_v25 }
 0x1c1   :  { %v1075_v1 = vadd.f32 %v825_v50, %v375_v15 }
 0x1c2   :  { %1481 = vrcp.f32 %v1076_v54 }
 0x1c8   :  { %v1478_v56 = vpop.eup %1477 }
 0x1c9   :  { %v1480_v32 = vpop.eup %1479  ;;  %v1137_v53 = vmul.f32 %v1478_v56, %v1073_v59 }
 0x1ca   :  { %v1150_v29 = vmul.f32 %v1480_v32, %v1099_v7 }
 0x1cb   :  { %1162 = vst [vmem:[#allocation2 + $0x58] sm:$0xff] %v1137_v53 }
 0x1cc   :  { %1175 = vst [vmem:[#allocation2 + $0xc0] sm:$0xff] %v1150_v29  ;;  %v1482_v8 = vpop.eup %1481 }
 0x1cd   :  { %v1138_v45 = vmul.f32 %v1482_v8, %v1075_v1 }
 0x1cf   :  { %1163 = vst [vmem:[#allocation2 + $0x60] sm:$0xff] %v1138_v45 }
 0x1d0   :  { %1494 = shalt.err (!%p1491_p4)
}
 0x1d1   :  { %s1495_s27 = scalar_lea.hbm %s2563_s3, 3200 }
 0x1d2   :  { %p1496_p5 = scmp.ne.s32.totalorder %s2563_s3, %s1495_s27  ;;  %p1499_p6 = scmp.lt.u32.totalorder %s1495_s27, %s2563_s3 }
 0x1d4   :  { %p1501_p7 = pnand %p1499_p6, %p1496_p5 }
 0x1d6   :  { %1504 = shalt.err (!%p1501_p7)
}
 0x1d7   :  { %s1509_s1 = smov 128   ;;  %s1510_s5 = smov 8  }
 0x1d8   :  { %1187 = dma.vmem_to_hbm [thread:$0]  %s1182_s2, 3200, %s2563_s3, [#allocation3], %s1509_s1, %s1509_s1, %s1510_s5  }
 0x1d9   :  { %1505 = dma.done.wait [#allocation3], 3200  }
 0x1da   :  { %1506 = vsyncadd [#allocation3], 4294964096 }
 0x1db   :  { %1191 = vsyncpa [#allocation3], 1 }

</bundles_post_ra>
